<compile_context>
chip_gen: v6e
topology: v6e:2x2x1
jax: 0.10.0
libtpu: 0.0.40
codegen_flags: <defaults>
</compile_context>

<pallas_src>
import functools

import numpy as np
import jax
import jax.numpy as jnp
from jax.experimental import pallas as pl
from jax.experimental.pallas import tpu as pltpu

BN_EPS = 1e-5


def _round_up(v, m):
    return ((v + m - 1) // m) * m


def _pick_row_tile(h, wp2, batch, target_flat):
    """Row-tile height: ~target_flat flat rows per grid step, and at least two
    total grid steps (batch * row_blocks) so both v7x TensorCores get work."""
    th = max(1, min(h, target_flat // max(wp2, 1)))
    if batch * (-(-h // th)) < 2 and h >= 2:
        th = -(-h // 2)
    return th


# ------------------------------ Pallas kernels -------------------------------


def _fused_kernel(*refs, th, wp2, base, nz, fuse_up):
    """conv1(1x1) -> conv2(3x3,pad1) -> conv3(1x1)+residual [-> up(1x1)] on one
    row block.  Inputs are flat (row*wp2 + col, C) views (no top/left pad):
    xt = 1-row top halo, xa = th image rows (also the residual), xb = 1-row
    bottom halo.  h1 (the 2C-wide conv1 output) stays in VMEM scratch."""
    if fuse_up:
        (xt_ref, xa_ref, xb_ref, cm_ref, w1_ref, b1_ref, w2_ref, b2_ref,
         w3_ref, b3_ref, wu_ref, bu_ref, o_ref, h1_ref) = refs
    else:
        (xt_ref, xa_ref, xb_ref, cm_ref, w1_ref, b1_ref, w2_ref, b2_ref,
         w3_ref, b3_ref, o_ref, h1_ref) = refs

    f32 = jnp.float32
    sdt = h1_ref.dtype
    mid = w1_ref.shape[1]
    n = th * wp2
    r = pl.program_id(1)
    last = pl.num_programs(1) - 1

    def conv1(x_ref, cm):
        h = jnp.dot(x_ref[...], w1_ref[...], preferred_element_type=f32)
        return ((h + b1_ref[...]) * cm).astype(sdt)

    cm_row = cm_ref[pl.ds(0, wp2), :]
    zrow = jnp.zeros((base, mid), sdt)

    # zero guard bands so the shifted 3x3 taps never read garbage
    h1_ref[pl.ds(0, base), :] = zrow
    h1_ref[pl.ds(base + (th + 2) * wp2, base), :] = zrow

    # conv1 + BN1 (column-masked so conv2 sees proper zero padding)
    h1_ref[pl.ds(base, wp2), :] = conv1(xt_ref, cm_row)
    h1_ref[pl.ds(base + wp2, n), :] = conv1(xa_ref, cm_ref[...])
    h1_ref[pl.ds(base + wp2 + n, wp2), :] = conv1(xb_ref, cm_row)

    @pl.when(r == 0)          # image row -1 is conv2 zero padding
    def _():
        h1_ref[pl.ds(base, wp2), :] = jnp.zeros((wp2, mid), sdt)

    @pl.when(r == last)       # rows >= H are conv2 zero padding / junk
    def _():
        h1_ref[pl.ds(base + (th + 2 - nz) * wp2, nz * wp2), :] = (
            jnp.zeros((nz * wp2, mid), sdt))

    # conv2: nine shifted flat views of h1, accumulated tap-by-tap in f32
    acc = jnp.dot(h1_ref[pl.ds(base - 1, n), :], w2_ref[0],
                  preferred_element_type=f32)
    for k in range(1, 9):
        dy, dx = divmod(k, 3)
        acc = acc + jnp.dot(h1_ref[pl.ds(base + dy * wp2 + dx - 1, n), :],
                            w2_ref[k], preferred_element_type=f32)
    h2 = (acc + b2_ref[...]).astype(sdt)

    # conv3 (1x1) + BN3 + residual (residual rows == xa rows, no gather)
    h3 = (jnp.dot(h2, w3_ref[...], preferred_element_type=f32)
          + b3_ref[...] + xa_ref[...].astype(f32))

    if fuse_up:
        out = (jnp.dot(h3.astype(sdt), wu_ref[...],
                       preferred_element_type=f32) + bu_ref[...])
    else:
        out = h3
    o_ref[...] = out.astype(o_ref.dtype)


def _down_kernel(xa_ref, xb_ref, w_ref, b_ref, o_ref, s_ref, *, ws2, n, base):
    """3x3 / stride-2 / pad-1 conv + BN bias on one row block, expressed as a
    2x2 unit-stride conv over a space-to-depth input (4 per-tap matmuls)."""
    sdt = s_ref.dtype
    kc = s_ref.shape[1]
    s_ref[pl.ds(0, n), :] = xa_ref[...]
    s_ref[pl.ds(n, ws2), :] = xb_ref[...]
    s_ref[pl.ds(n + ws2, base), :] = jnp.zeros((base, kc), sdt)

    acc = jnp.dot(s_ref[pl.ds(0, n), :], w_ref[0],
                  preferred_element_type=jnp.float32)
    for k in range(1, 4):
        a, bb = divmod(k, 2)
        acc = acc + jnp.dot(s_ref[pl.ds(a * ws2 + bb, n), :], w_ref[k],
                            preferred_element_type=jnp.float32)
    o_ref[...] = (acc + b_ref[...]).astype(o_ref.dtype)


# --------------------------------- wrappers -----------------------------------


def _fused_convs(x_nhwc, params, fuse_up, cdt, target_flat, vmem_limit_mb):
    b, h, w, c = x_nhwc.shape
    mid = params["w1"].shape[1]
    planes_out = params["wu"].shape[-1] if fuse_up else c

    sub = 8 if cdt.itemsize == 4 else 16      # sublane packing of the scratch
    base = sub
    wp2 = _round_up(w + 1, sub)               # padded flat width
    th = _pick_row_tile(h, wp2, b, target_flat)
    r_blocks = -(-h // th)
    hp_rows = r_blocks * th + 1               # + 1 zero row for the last halo
    n = th * wp2
    nz = r_blocks * th + 1 - h                # trailing scratch rows to zero

    x = x_nhwc.astype(cdt)
    xflat = jnp.pad(x, ((0, 0), (0, hp_rows - h), (0, wp2 - w), (0, 0)))
    xflat = xflat.reshape(b, hp_rows * wp2, c)

    # column part of the conv2 zero-pad mask (same pattern for every row)
    col = jnp.arange(wp2)
    cmask = jnp.tile((col < w).astype(jnp.float32), th).reshape(n, 1)

    w1 = params["w1"].astype(cdt)
    w2 = params["w2"].astype(cdt)
    w3 = params["w3"].astype(cdt)
    b1, b2, b3 = params["b1"], params["b2"], params["b3"]

    in_specs = [
        pl.BlockSpec((None, wp2, c),
                     lambda bb, rr: (bb, jnp.maximum(rr * th - 1, 0), 0)),
        pl.BlockSpec((None, n, c), lambda bb, rr: (bb, rr, 0)),
        pl.BlockSpec((None, wp2, c), lambda bb, rr: (bb, (rr + 1) * th, 0)),
        pl.BlockSpec((n, 1), lambda bb, rr: (0, 0)),
        pl.BlockSpec((c, mid), lambda bb, rr: (0, 0)),
        pl.BlockSpec((1, mid), lambda bb, rr: (0, 0)),
        pl.BlockSpec((9, mid, mid), lambda bb, rr: (0, 0, 0)),
        pl.BlockSpec((1, mid), lambda bb, rr: (0, 0)),
        pl.BlockSpec((mid, c), lambda bb, rr: (0, 0)),
        pl.BlockSpec((1, c), lambda bb, rr: (0, 0)),
    ]
    args = [xflat, xflat, xflat, cmask, w1, b1, w2, b2, w3, b3]
    if fuse_up:
        wu = params["wu"].astype(cdt)
        in_specs += [pl.BlockSpec((c, planes_out), lambda bb, rr: (0, 0)),
                     pl.BlockSpec((1, planes_out), lambda bb, rr: (0, 0))]
        args += [wu, params["bu"]]

    m = b * r_blocks * n
    flops = 2 * m * (c * mid + 9 * mid * mid + mid * c)
    wbytes = c * mid + 9 * mid * mid + mid * c
    if fuse_up:
        flops += 2 * m * c * planes_out
        wbytes += c * planes_out
    bytes_accessed = int(
        cdt.itemsize * (xflat.size + b * r_blocks * 2 * wp2 * c
                        + m * planes_out + wbytes)
        + 4 * (cmask.size + 2 * mid + c + planes_out))

    out_flat = pl.pallas_call(
        functools.partial(_fused_kernel, th=th, wp2=wp2, base=base, nz=nz,
                          fuse_up=fuse_up),
        out_shape=jax.ShapeDtypeStruct((b, r_blocks * n, planes_out), cdt),
        grid_spec=pltpu.PrefetchScalarGridSpec(
            num_scalar_prefetch=0,
            grid=(b, r_blocks),
            in_specs=in_specs,
            out_specs=pl.BlockSpec((None, n, planes_out),
                                   lambda bb, rr: (bb, rr, 0)),
            scratch_shapes=[pltpu.VMEM((2 * base + (th + 2) * wp2, mid), cdt)],
        ),
        compiler_params=pltpu.CompilerParams(
            dimension_semantics=("parallel", "parallel"),
            vmem_limit_bytes=vmem_limit_mb * 1024 * 1024),
        cost_estimate=pl.CostEstimate(flops=int(flops), transcendentals=0,
                                      bytes_accessed=bytes_accessed),
    )(*args)

    return out_flat.reshape(b, r_blocks * th, wp2, planes_out)[:, :h, :w, :]


def _down3x3s2_bn(x_nhwc, wd, bias, cdt, target_flat, vmem_limit_mb):
    """3x3 stride-2 pad-1 conv + BN bias; wd is the (4, 4C, planes) space-to-
    depth rearranged weight with the BN scale already folded in."""
    b, h, w, c = x_nhwc.shape
    planes = wd.shape[-1]
    ho = (h + 1) // 2
    wo = (w + 1) // 2

    sub = 8 if cdt.itemsize == 4 else 16
    base = sub
    ws2 = _round_up(wo + 1, sub)
    tho = _pick_row_tile(ho, ws2, b, target_flat)
    blocks = -(-ho // tho)
    hp2 = blocks * tho + 1
    n = tho * ws2

    x = x_nhwc.astype(cdt)
    xp = jnp.pad(x, ((0, 0), (1, 2 * hp2 - h - 1), (1, 2 * ws2 - w - 1), (0, 0)))
    s2d = xp.reshape(b, hp2, 2, ws2, 2, c)
    s2d = jnp.transpose(s2d, (0, 1, 3, 2, 4, 5)).reshape(b, hp2 * ws2, 4 * c)
    wd = wd.astype(cdt)

    m = b * blocks * n
    cost = pl.CostEstimate(
        flops=int(2 * m * 16 * c * planes), transcendentals=0,
        bytes_accessed=int(cdt.itemsize * (s2d.size + m * planes
                                           + 16 * c * planes) + 4 * planes))

    out = pl.pallas_call(
        functools.partial(_down_kernel, ws2=ws2, n=n, base=base),
        out_shape=jax.ShapeDtypeStruct((b, blocks * n, planes), cdt),
        grid_spec=pltpu.PrefetchScalarGridSpec(
            num_scalar_prefetch=0,
            grid=(b, blocks),
            in_specs=[
                pl.BlockSpec((None, n, 4 * c), lambda bb, rr: (bb, rr, 0)),
                pl.BlockSpec((None, ws2, 4 * c),
                             lambda bb, rr: (bb, (rr + 1) * tho, 0)),
                pl.BlockSpec((4, 4 * c, planes), lambda bb, rr: (0, 0, 0)),
                pl.BlockSpec((1, planes), lambda bb, rr: (0, 0)),
            ],
            out_specs=pl.BlockSpec((None, n, planes),
                                   lambda bb, rr: (bb, rr, 0)),
            scratch_shapes=[pltpu.VMEM((n + ws2 + base, 4 * c), cdt)],
        ),
        compiler_params=pltpu.CompilerParams(
            dimension_semantics=("parallel", "parallel"),
            vmem_limit_bytes=vmem_limit_mb * 1024 * 1024),
        cost_estimate=cost,
    )(s2d, s2d, wd, bias)

    return out.reshape(b, blocks * tho, ws2, planes)[:, :ho, :wo, :]


def resnet_block_forward(x_nchw, params, down=False, *, compute_dtype=None,
                         target_flat=1024, vmem_limit_mb=48):
    """Pallas implementation of ResnetBlock.forward (NCHW in / NCHW out)."""
    cdt = np.dtype(compute_dtype) if compute_dtype is not None \
        else np.dtype(x_nchw.dtype)
    x = jnp.transpose(x_nchw, (0, 2, 3, 1))      # boundary layout plumbing only
    out = _fused_convs(x, params, not down, cdt, target_flat, vmem_limit_mb)
    if down:
        out = _down3x3s2_bn(out, params["wu"], params["bu"], cdt,
                            target_flat, vmem_limit_mb)
    return jnp.transpose(out, (0, 3, 1, 2))


# ------------------------ params + pure-JAX reference -------------------------


def _bn_eval_affine(key, c):
    """Eval-mode BatchNorm folded to per-channel scale/bias; random stats so the
    scale-folding and conv2 padding logic is actually exercised."""
    kg, kb, km, kv = jax.random.split(key, 4)
    gamma = 1.0 + 0.1 * jax.random.normal(kg, (c,), jnp.float32)
    beta = 0.1 * jax.random.normal(kb, (c,), jnp.float32)
    mean = 0.1 * jax.random.normal(km, (c,), jnp.float32)
    var = jnp.abs(1.0 + 0.1 * jax.random.normal(kv, (c,), jnp.float32))
    scale = gamma * jax.lax.rsqrt(var + BN_EPS)
    bias = beta - mean * scale
    return scale, bias


def _make_down_weight(w_hwio, scale):
    """(3,3,C,P) weight -> (4, 4C, P) weight of the equivalent 2x2 unit-stride
    conv over the 2x2 space-to-depth input, with the BN scale folded in."""
    c, planes = w_hwio.shape[2], w_hwio.shape[3]
    w = w_hwio * scale[None, None, None, :]
    wd = jnp.zeros((2, 2, 2, 2, c, planes), w.dtype)
    for a in range(2):
        for b in range(2):
            for py in range(2):
                for px in range(2):
                    ky, kx = 2 * a + py, 2 * b + px
                    if ky < 3 and kx < 3:
                        wd = wd.at[a, b, py, px].set(w[ky, kx])
    return wd.reshape(4, 4 * c, planes)


def init_params(key, inplanes, planes, down=False):
    mid = inplanes * 2
    k1, k2, k3, k4, kb1, kb2, kb3, kb4 = jax.random.split(key, 8)
    w1_oihw = 0.1 * jax.random.normal(k1, (mid, inplanes, 1, 1), jnp.float32)
    w2_oihw = 0.1 * jax.random.normal(k2, (mid, mid, 3, 3), jnp.float32)
    w3_oihw = 0.1 * jax.random.normal(k3, (inplanes, mid, 1, 1), jnp.float32)
    if down:
        wu_oihw = 0.1 * jax.random.normal(k4, (planes, inplanes, 3, 3),
                                          jnp.float32)
    else:
        wu_oihw = 0.1 * jax.random.normal(k4, (planes, inplanes, 1, 1),
                                          jnp.float32)

    s1, b1 = _bn_eval_affine(kb1, mid)
    s2, b2 = _bn_eval_affine(kb2, mid)
    s3, b3 = _bn_eval_affine(kb3, inplanes)
    su, bu = _bn_eval_affine(kb4, planes)

    # kernel-layout weights, BN scale folded in (bias-only epilogue in-kernel)
    w1 = jnp.transpose(w1_oihw[:, :, 0, 0], (1, 0)) * s1[None, :]
    w2 = jnp.transpose(w2_oihw, (2, 3, 1, 0)) * s2[None, None, None, :]
    w2 = w2.reshape(9, mid, mid)                        # (ky*3+kx, cin, cout)
    w3 = jnp.transpose(w3_oihw[:, :, 0, 0], (1, 0)) * s3[None, :]
    if down:
        wu = _make_down_weight(jnp.transpose(wu_oihw, (2, 3, 1, 0)), su)
    else:
        wu = jnp.transpose(wu_oihw[:, :, 0, 0], (1, 0)) * su[None, :]

    return {
        "w1": w1, "b1": b1.reshape(1, -1),
        "w2": w2, "b2": b2.reshape(1, -1),
        "w3": w3, "b3": b3.reshape(1, -1),
        "wu": wu, "bu": bu.reshape(1, -1),
        # OIHW weights + unfolded BN affine for the pure-JAX reference
        "_w1": w1_oihw, "_s1": s1, "_b1": b1,
        "_w2": w2_oihw, "_s2": s2, "_b2": b2,
        "_w3": w3_oihw, "_s3": s3, "_b3": b3,
        "_wu": wu_oihw, "_su": su, "_bu": bu,
    }


def _ref_conv_bn(x, w_oihw, scale, bias, stride=1, pad=0):
    y = jax.lax.conv_general_dilated(
        x, w_oihw, (stride, stride), [(pad, pad), (pad, pad)],
        dimension_numbers=("NCHW", "OIHW", "NCHW"))
    return y * scale[None, :, None, None] + bias[None, :, None, None]


def ref_resnet_block(x, p, down=False):
    out = _ref_conv_bn(x, p["_w1"], p["_s1"], p["_b1"])
    out = _ref_conv_bn(out, p["_w2"], p["_s2"], p["_b2"], stride=1, pad=1)
    out = _ref_conv_bn(out, p["_w3"], p["_s3"], p["_b3"])
    out = out + x
    if down:
        return _ref_conv_bn(out, p["_wu"], p["_su"], p["_bu"], stride=2, pad=1)
    return _ref_conv_bn(out, p["_wu"], p["_su"], p["_bu"])


# ----------------------------------- main -------------------------------------

if __name__ == "__main__":
    key = jax.random.PRNGKey(0)
    kp, kx = jax.random.split(key)

    B, C, H, W = 2, 4, 16, 16          # inplanes = 4
    planes = 8
    x = jax.random.normal(kx, (B, C, H, W), jnp.float32)

    for down in (False, True):
        params = init_params(kp, inplanes=C, planes=planes, down=down)
        ref = jax.block_until_ready(ref_resnet_block(x, params, down=down))
        expect = (B, planes, H // 2, W // 2) if down else (B, planes, H, W)
        assert ref.shape == expect, (down, ref.shape)

        # f32 path, small row tiles so multi-block halo logic is exercised
        out = jax.block_until_ready(
            resnet_block_forward(x, params, down=down, target_flat=96))
        assert out.shape == expect, (down, out.shape)
        err = float(jnp.max(jnp.abs(out - ref)))
        assert jnp.allclose(out, ref, atol=1e-4, rtol=1e-4), (down, err)

        # f32 path, default (single-row-block) tiling
        out1 = jax.block_until_ready(
            resnet_block_forward(x, params, down=down))
        err1 = float(jnp.max(jnp.abs(out1 - ref)))
        assert jnp.allclose(out1, ref, atol=1e-4, rtol=1e-4), (down, err1)

        # bf16 data path (f32 accumulation); loose check vs the f32 reference
        out_bf = jax.block_until_ready(
            resnet_block_forward(x, params, down=down,
                                 compute_dtype=jnp.bfloat16, target_flat=96))
        err_bf = float(jnp.max(jnp.abs(out_bf.astype(jnp.float32) - ref)))
        tol = 5e-2 * (1.0 + float(jnp.max(jnp.abs(ref))))
        assert out_bf.shape == expect and err_bf < tol, (down, err_bf, tol)

    print("KERNEL_OK")
</pallas_src>

<mosaic_0001>
module attributes {stable_mosaic.version = 11 : i64} {
  func.func @_fused_kernel(%arg0: i32, %arg1: i32, %arg2: memref<1x24x4xf32, #tpu.memory_space<vmem>>, %arg3: memref<1x96x4xf32, #tpu.memory_space<vmem>>, %arg4: memref<1x24x4xf32, #tpu.memory_space<vmem>>, %arg5: memref<96x1xf32, #tpu.memory_space<vmem>>, %arg6: memref<4x8xf32, #tpu.memory_space<vmem>>, %arg7: memref<1x8xf32, #tpu.memory_space<vmem>>, %arg8: memref<9x8x8xf32, #tpu.memory_space<vmem>>, %arg9: memref<1x8xf32, #tpu.memory_space<vmem>>, %arg10: memref<8x4xf32, #tpu.memory_space<vmem>>, %arg11: memref<1x4xf32, #tpu.memory_space<vmem>>, %arg12: memref<4x8xf32, #tpu.memory_space<vmem>>, %arg13: memref<1x8xf32, #tpu.memory_space<vmem>>, %arg14: memref<1x96x8xf32, #tpu.memory_space<vmem>>, %arg15: memref<160x8xf32, #tpu.memory_space<vmem>>) attributes {dimension_semantics = [#tpu.dimension_semantics<parallel>, #tpu.dimension_semantics<parallel>], iteration_bounds = array<i64: 2, 4>, scalar_prefetch = 0 : i64, scratch_operands = 1 : i64, tpu.core_type = #tpu.core_type<tc>, window_params = [{transform_indices = @transform_0, window_bounds = array<i64: 1, 24, 4>}, {transform_indices = @transform_1, window_bounds = array<i64: 1, 96, 4>}, {transform_indices = @transform_2, window_bounds = array<i64: 1, 24, 4>}, {pipeline_mode = #tpu.pipeline_mode<synchronous>, transform_indices = @transform_3, window_bounds = array<i64: 96, 1>}, {pipeline_mode = #tpu.pipeline_mode<synchronous>, transform_indices = @transform_4, window_bounds = array<i64: 4, 8>}, {pipeline_mode = #tpu.pipeline_mode<synchronous>, transform_indices = @transform_5, window_bounds = array<i64: 1, 8>}, {pipeline_mode = #tpu.pipeline_mode<synchronous>, transform_indices = @transform_6, window_bounds = array<i64: 9, 8, 8>}, {pipeline_mode = #tpu.pipeline_mode<synchronous>, transform_indices = @transform_7, window_bounds = array<i64: 1, 8>}, {pipeline_mode = #tpu.pipeline_mode<synchronous>, transform_indices = @transform_8, window_bounds = array<i64: 8, 4>}, {pipeline_mode = #tpu.pipeline_mode<synchronous>, transform_indices = @transform_9, window_bounds = array<i64: 1, 4>}, {pipeline_mode = #tpu.pipeline_mode<synchronous>, transform_indices = @transform_10, window_bounds = array<i64: 4, 8>}, {pipeline_mode = #tpu.pipeline_mode<synchronous>, transform_indices = @transform_11, window_bounds = array<i64: 1, 8>}, {transform_indices = @transform_12, window_bounds = array<i64: 1, 96, 8>}]} {
    %c0 = arith.constant 0 : index
    %c0_0 = arith.constant 0 : index
    %0 = vector.load %arg5[%c0, %c0_0] : memref<96x1xf32, #tpu.memory_space<vmem>>, vector<24x1xf32>
    %cst = arith.constant 0.000000e+00 : f32
    %1 = vector.broadcast %cst : f32 to vector<8x8xf32>
    %c0_1 = arith.constant 0 : index
    %c0_2 = arith.constant 0 : index
    %2 = vector.load %arg15[%c0_1, %c0_2] : memref<160x8xf32, #tpu.memory_space<vmem>>, vector<8x8xf32>
    tpu.vector_store %arg15[%c0_1, %c0_2], %1 {strides = array<i32>} : memref<160x8xf32, #tpu.memory_space<vmem>>, vector<8x8xf32>,
    %c152 = arith.constant 152 : index
    %c0_3 = arith.constant 0 : index
    %3 = vector.load %arg15[%c152, %c0_3] : memref<160x8xf32, #tpu.memory_space<vmem>>, vector<8x8xf32>
    tpu.vector_store %arg15[%c152, %c0_3], %1 {strides = array<i32>} : memref<160x8xf32, #tpu.memory_space<vmem>>, vector<8x8xf32>,
    %c0_4 = arith.constant 0 : index
    %c0_5 = arith.constant 0 : index
    %c0_6 = arith.constant 0 : index
    %4 = vector.load %arg2[%c0_4, %c0_5, %c0_6] : memref<1x24x4xf32, #tpu.memory_space<vmem>>, vector<1x24x4xf32>
    %5 = vector.shape_cast %4 : vector<1x24x4xf32> to vector<24x4xf32>
    %c0_7 = arith.constant 0 : index
    %c0_8 = arith.constant 0 : index
    %6 = vector.load %arg6[%c0_7, %c0_8] : memref<4x8xf32, #tpu.memory_space<vmem>>, vector<4x8xf32>
    %cst_9 = arith.constant dense<0.000000e+00> : vector<24x8xf32>
    %7 = tpu.matmul %5, %6, %cst_9 {dimension_numbers = #tpu.dot_dimension_numbers<[1], [0], [0], [1], [0, 0, 1, 1], [], []>} : vector<24x4xf32>, vector<4x8xf32>, vector<24x8xf32> -> vector<24x8xf32>
    %c0_10 = arith.constant 0 : index
    %c0_11 = arith.constant 0 : index
    %8 = vector.load %arg7[%c0_10, %c0_11] : memref<1x8xf32, #tpu.memory_space<vmem>>, vector<1x8xf32>
    %9 = vector.broadcast %8 : vector<1x8xf32> to vector<24x8xf32>
    %10 = arith.addf %7, %9 : vector<24x8xf32>
    %11 = vector.broadcast %0 : vector<24x1xf32> to vector<24x8xf32>
    %12 = arith.mulf %10, %11 : vector<24x8xf32>
    %c8 = arith.constant 8 : index
    %c0_12 = arith.constant 0 : index
    %13 = vector.load %arg15[%c8, %c0_12] : memref<160x8xf32, #tpu.memory_space<vmem>>, vector<24x8xf32>
    tpu.vector_store %arg15[%c8, %c0_12], %12 {strides = array<i32>} : memref<160x8xf32, #tpu.memory_space<vmem>>, vector<24x8xf32>,
    %c0_13 = arith.constant 0 : index
    %c0_14 = arith.constant 0 : index
    %14 = vector.load %arg5[%c0_13, %c0_14] : memref<96x1xf32, #tpu.memory_space<vmem>>, vector<96x1xf32>
    %c0_15 = arith.constant 0 : index
    %c0_16 = arith.constant 0 : index
    %c0_17 = arith.constant 0 : index
    %15 = vector.load %arg3[%c0_15, %c0_16, %c0_17] : memref<1x96x4xf32, #tpu.memory_space<vmem>>, vector<1x96x4xf32>
    %16 = vector.shape_cast %15 : vector<1x96x4xf32> to vector<96x4xf32>
    %c0_18 = arith.constant 0 : index
    %c0_19 = arith.constant 0 : index
    %17 = vector.load %arg6[%c0_18, %c0_19] : memref<4x8xf32, #tpu.memory_space<vmem>>, vector<4x8xf32>
    %cst_20 = arith.constant dense<0.000000e+00> : vector<96x8xf32>
    %18 = tpu.matmul %16, %17, %cst_20 {dimension_numbers = #tpu.dot_dimension_numbers<[1], [0], [0], [1], [0, 0, 1, 1], [], []>} : vector<96x4xf32>, vector<4x8xf32>, vector<96x8xf32> -> vector<96x8xf32>
    %c0_21 = arith.constant 0 : index
    %c0_22 = arith.constant 0 : index
    %19 = vector.load %arg7[%c0_21, %c0_22] : memref<1x8xf32, #tpu.memory_space<vmem>>, vector<1x8xf32>
    %20 = vector.broadcast %19 : vector<1x8xf32> to vector<96x8xf32>
    %21 = arith.addf %18, %20 : vector<96x8xf32>
    %22 = vector.broadcast %14 : vector<96x1xf32> to vector<96x8xf32>
    %23 = arith.mulf %21, %22 : vector<96x8xf32>
    %c32 = arith.constant 32 : index
    %c0_23 = arith.constant 0 : index
    %24 = vector.load %arg15[%c32, %c0_23] : memref<160x8xf32, #tpu.memory_space<vmem>>, vector<96x8xf32>
    tpu.vector_store %arg15[%c32, %c0_23], %23 {strides = array<i32>} : memref<160x8xf32, #tpu.memory_space<vmem>>, vector<96x8xf32>,
    %c0_24 = arith.constant 0 : index
    %c0_25 = arith.constant 0 : index
    %c0_26 = arith.constant 0 : index
    %25 = vector.load %arg4[%c0_24, %c0_25, %c0_26] : memref<1x24x4xf32, #tpu.memory_space<vmem>>, vector<1x24x4xf32>
    %26 = vector.shape_cast %25 : vector<1x24x4xf32> to vector<24x4xf32>
    %c0_27 = arith.constant 0 : index
    %c0_28 = arith.constant 0 : index
    %27 = vector.load %arg6[%c0_27, %c0_28] : memref<4x8xf32, #tpu.memory_space<vmem>>, vector<4x8xf32>
    %cst_29 = arith.constant dense<0.000000e+00> : vector<24x8xf32>
    %28 = tpu.matmul %26, %27, %cst_29 {dimension_numbers = #tpu.dot_dimension_numbers<[1], [0], [0], [1], [0, 0, 1, 1], [], []>} : vector<24x4xf32>, vector<4x8xf32>, vector<24x8xf32> -> vector<24x8xf32>
    %c0_30 = arith.constant 0 : index
    %c0_31 = arith.constant 0 : index
    %29 = vector.load %arg7[%c0_30, %c0_31] : memref<1x8xf32, #tpu.memory_space<vmem>>, vector<1x8xf32>
    %30 = vector.broadcast %29 : vector<1x8xf32> to vector<24x8xf32>
    %31 = arith.addf %28, %30 : vector<24x8xf32>
    %32 = vector.broadcast %0 : vector<24x1xf32> to vector<24x8xf32>
    %33 = arith.mulf %31, %32 : vector<24x8xf32>
    %c128 = arith.constant 128 : index
    %c0_32 = arith.constant 0 : index
    %34 = vector.load %arg15[%c128, %c0_32] : memref<160x8xf32, #tpu.memory_space<vmem>>, vector<24x8xf32>
    tpu.vector_store %arg15[%c128, %c0_32], %33 {strides = array<i32>} : memref<160x8xf32, #tpu.memory_space<vmem>>, vector<24x8xf32>,
    %c0_i32 = arith.constant 0 : i32
    %35 = arith.cmpi eq, %arg1, %c0_i32 : i32
    %36 = arith.extui %35 : i1 to i32
    %c0_i32_33 = arith.constant 0 : i32
    %37 = arith.cmpi ne, %36, %c0_i32_33 : i32
    scf.if %37 {
      %cst_94 = arith.constant 0.000000e+00 : f32
      %104 = vector.broadcast %cst_94 : f32 to vector<24x8xf32>
      %c8_95 = arith.constant 8 : index
      %c0_96 = arith.constant 0 : index
      %105 = vector.load %arg15[%c8_95, %c0_96] : memref<160x8xf32, #tpu.memory_space<vmem>>, vector<24x8xf32>
      tpu.vector_store %arg15[%c8_95, %c0_96], %104 {strides = array<i32>} : memref<160x8xf32, #tpu.memory_space<vmem>>, vector<24x8xf32>,
    } else {
    }
    %c3_i32 = arith.constant 3 : i32
    %38 = arith.cmpi eq, %arg1, %c3_i32 : i32
    %39 = arith.extui %38 : i1 to i32
    %c0_i32_34 = arith.constant 0 : i32
    %40 = arith.cmpi ne, %39, %c0_i32_34 : i32
    scf.if %40 {
      %cst_94 = arith.constant 0.000000e+00 : f32
      %104 = vector.broadcast %cst_94 : f32 to vector<24x8xf32>
      %c128_95 = arith.constant 128 : index
      %c0_96 = arith.constant 0 : index
      %105 = vector.load %arg15[%c128_95, %c0_96] : memref<160x8xf32, #tpu.memory_space<vmem>>, vector<24x8xf32>
      tpu.vector_store %arg15[%c128_95, %c0_96], %104 {strides = array<i32>} : memref<160x8xf32, #tpu.memory_space<vmem>>, vector<24x8xf32>,
    } else {
    }
    %c7 = arith.constant 7 : index
    %c0_35 = arith.constant 0 : index
    %41 = vector.load %arg15[%c7, %c0_35] : memref<160x8xf32, #tpu.memory_space<vmem>>, vector<96x8xf32>
    %c0_36 = arith.constant 0 : index
    %c0_37 = arith.constant 0 : index
    %c0_38 = arith.constant 0 : index
    %42 = vector.load %arg8[%c0_36, %c0_37, %c0_38] : memref<9x8x8xf32, #tpu.memory_space<vmem>>, vector<1x8x8xf32>
    %43 = vector.shape_cast %42 : vector<1x8x8xf32> to vector<8x8xf32>
    %cst_39 = arith.constant dense<0.000000e+00> : vector<96x8xf32>
    %44 = tpu.matmul %41, %43, %cst_39 {dimension_numbers = #tpu.dot_dimension_numbers<[1], [0], [0], [1], [0, 0, 1, 1], [], []>} : vector<96x8xf32>, vector<8x8xf32>, vector<96x8xf32> -> vector<96x8xf32>
    %c8_40 = arith.constant 8 : index
    %c0_41 = arith.constant 0 : index
    %45 = vector.load %arg15[%c8_40, %c0_41] : memref<160x8xf32, #tpu.memory_space<vmem>>, vector<96x8xf32>
    %c1 = arith.constant 1 : index
    %c0_42 = arith.constant 0 : index
    %c0_43 = arith.constant 0 : index
    %46 = vector.load %arg8[%c1, %c0_42, %c0_43] : memref<9x8x8xf32, #tpu.memory_space<vmem>>, vector<1x8x8xf32>
    %47 = vector.shape_cast %46 : vector<1x8x8xf32> to vector<8x8xf32>
    %cst_44 = arith.constant dense<0.000000e+00> : vector<96x8xf32>
    %48 = tpu.matmul %45, %47, %cst_44 {dimension_numbers = #tpu.dot_dimension_numbers<[1], [0], [0], [1], [0, 0, 1, 1], [], []>} : vector<96x8xf32>, vector<8x8xf32>, vector<96x8xf32> -> vector<96x8xf32>
    %49 = arith.addf %44, %48 : vector<96x8xf32>
    %c9 = arith.constant 9 : index
    %c0_45 = arith.constant 0 : index
    %50 = vector.load %arg15[%c9, %c0_45] : memref<160x8xf32, #tpu.memory_space<vmem>>, vector<96x8xf32>
    %c2 = arith.constant 2 : index
    %c0_46 = arith.constant 0 : index
    %c0_47 = arith.constant 0 : index
    %51 = vector.load %arg8[%c2, %c0_46, %c0_47] : memref<9x8x8xf32, #tpu.memory_space<vmem>>, vector<1x8x8xf32>
    %52 = vector.shape_cast %51 : vector<1x8x8xf32> to vector<8x8xf32>
    %cst_48 = arith.constant dense<0.000000e+00> : vector<96x8xf32>
    %53 = tpu.matmul %50, %52, %cst_48 {dimension_numbers = #tpu.dot_dimension_numbers<[1], [0], [0], [1], [0, 0, 1, 1], [], []>} : vector<96x8xf32>, vector<8x8xf32>, vector<96x8xf32> -> vector<96x8xf32>
    %54 = arith.addf %49, %53 : vector<96x8xf32>
    %c31 = arith.constant 31 : index
    %c0_49 = arith.constant 0 : index
    %55 = vector.load %arg15[%c31, %c0_49] : memref<160x8xf32, #tpu.memory_space<vmem>>, vector<96x8xf32>
    %c3 = arith.constant 3 : index
    %c0_50 = arith.constant 0 : index
    %c0_51 = arith.constant 0 : index
    %56 = vector.load %arg8[%c3, %c0_50, %c0_51] : memref<9x8x8xf32, #tpu.memory_space<vmem>>, vector<1x8x8xf32>
    %57 = vector.shape_cast %56 : vector<1x8x8xf32> to vector<8x8xf32>
    %cst_52 = arith.constant dense<0.000000e+00> : vector<96x8xf32>
    %58 = tpu.matmul %55, %57, %cst_52 {dimension_numbers = #tpu.dot_dimension_numbers<[1], [0], [0], [1], [0, 0, 1, 1], [], []>} : vector<96x8xf32>, vector<8x8xf32>, vector<96x8xf32> -> vector<96x8xf32>
    %59 = arith.addf %54, %58 : vector<96x8xf32>
    %c32_53 = arith.constant 32 : index
    %c0_54 = arith.constant 0 : index
    %60 = vector.load %arg15[%c32_53, %c0_54] : memref<160x8xf32, #tpu.memory_space<vmem>>, vector<96x8xf32>
    %c4 = arith.constant 4 : index
    %c0_55 = arith.constant 0 : index
    %c0_56 = arith.constant 0 : index
    %61 = vector.load %arg8[%c4, %c0_55, %c0_56] : memref<9x8x8xf32, #tpu.memory_space<vmem>>, vector<1x8x8xf32>
    %62 = vector.shape_cast %61 : vector<1x8x8xf32> to vector<8x8xf32>
    %cst_57 = arith.constant dense<0.000000e+00> : vector<96x8xf32>
    %63 = tpu.matmul %60, %62, %cst_57 {dimension_numbers = #tpu.dot_dimension_numbers<[1], [0], [0], [1], [0, 0, 1, 1], [], []>} : vector<96x8xf32>, vector<8x8xf32>, vector<96x8xf32> -> vector<96x8xf32>
    %64 = arith.addf %59, %63 : vector<96x8xf32>
    %c33 = arith.constant 33 : index
    %c0_58 = arith.constant 0 : index
    %65 = vector.load %arg15[%c33, %c0_58] : memref<160x8xf32, #tpu.memory_space<vmem>>, vector<96x8xf32>
    %c5 = arith.constant 5 : index
    %c0_59 = arith.constant 0 : index
    %c0_60 = arith.constant 0 : index
    %66 = vector.load %arg8[%c5, %c0_59, %c0_60] : memref<9x8x8xf32, #tpu.memory_space<vmem>>, vector<1x8x8xf32>
    %67 = vector.shape_cast %66 : vector<1x8x8xf32> to vector<8x8xf32>
    %cst_61 = arith.constant dense<0.000000e+00> : vector<96x8xf32>
    %68 = tpu.matmul %65, %67, %cst_61 {dimension_numbers = #tpu.dot_dimension_numbers<[1], [0], [0], [1], [0, 0, 1, 1], [], []>} : vector<96x8xf32>, vector<8x8xf32>, vector<96x8xf32> -> vector<96x8xf32>
    %69 = arith.addf %64, %68 : vector<96x8xf32>
    %c55 = arith.constant 55 : index
    %c0_62 = arith.constant 0 : index
    %70 = vector.load %arg15[%c55, %c0_62] : memref<160x8xf32, #tpu.memory_space<vmem>>, vector<96x8xf32>
    %c6 = arith.constant 6 : index
    %c0_63 = arith.constant 0 : index
    %c0_64 = arith.constant 0 : index
    %71 = vector.load %arg8[%c6, %c0_63, %c0_64] : memref<9x8x8xf32, #tpu.memory_space<vmem>>, vector<1x8x8xf32>
    %72 = vector.shape_cast %71 : vector<1x8x8xf32> to vector<8x8xf32>
    %cst_65 = arith.constant dense<0.000000e+00> : vector<96x8xf32>
    %73 = tpu.matmul %70, %72, %cst_65 {dimension_numbers = #tpu.dot_dimension_numbers<[1], [0], [0], [1], [0, 0, 1, 1], [], []>} : vector<96x8xf32>, vector<8x8xf32>, vector<96x8xf32> -> vector<96x8xf32>
    %74 = arith.addf %69, %73 : vector<96x8xf32>
    %c56 = arith.constant 56 : index
    %c0_66 = arith.constant 0 : index
    %75 = vector.load %arg15[%c56, %c0_66] : memref<160x8xf32, #tpu.memory_space<vmem>>, vector<96x8xf32>
    %c7_67 = arith.constant 7 : index
    %c0_68 = arith.constant 0 : index
    %c0_69 = arith.constant 0 : index
    %76 = vector.load %arg8[%c7_67, %c0_68, %c0_69] : memref<9x8x8xf32, #tpu.memory_space<vmem>>, vector<1x8x8xf32>
    %77 = vector.shape_cast %76 : vector<1x8x8xf32> to vector<8x8xf32>
    %cst_70 = arith.constant dense<0.000000e+00> : vector<96x8xf32>
    %78 = tpu.matmul %75, %77, %cst_70 {dimension_numbers = #tpu.dot_dimension_numbers<[1], [0], [0], [1], [0, 0, 1, 1], [], []>} : vector<96x8xf32>, vector<8x8xf32>, vector<96x8xf32> -> vector<96x8xf32>
    %79 = arith.addf %74, %78 : vector<96x8xf32>
    %c57 = arith.constant 57 : index
    %c0_71 = arith.constant 0 : index
    %80 = vector.load %arg15[%c57, %c0_71] : memref<160x8xf32, #tpu.memory_space<vmem>>, vector<96x8xf32>
    %c8_72 = arith.constant 8 : index
    %c0_73 = arith.constant 0 : index
    %c0_74 = arith.constant 0 : index
    %81 = vector.load %arg8[%c8_72, %c0_73, %c0_74] : memref<9x8x8xf32, #tpu.memory_space<vmem>>, vector<1x8x8xf32>
    %82 = vector.shape_cast %81 : vector<1x8x8xf32> to vector<8x8xf32>
    %cst_75 = arith.constant dense<0.000000e+00> : vector<96x8xf32>
    %83 = tpu.matmul %80, %82, %cst_75 {dimension_numbers = #tpu.dot_dimension_numbers<[1], [0], [0], [1], [0, 0, 1, 1], [], []>} : vector<96x8xf32>, vector<8x8xf32>, vector<96x8xf32> -> vector<96x8xf32>
    %84 = arith.addf %79, %83 : vector<96x8xf32>
    %c0_76 = arith.constant 0 : index
    %c0_77 = arith.constant 0 : index
    %85 = vector.load %arg9[%c0_76, %c0_77] : memref<1x8xf32, #tpu.memory_space<vmem>>, vector<1x8xf32>
    %86 = vector.broadcast %85 : vector<1x8xf32> to vector<96x8xf32>
    %87 = arith.addf %84, %86 : vector<96x8xf32>
    %c0_78 = arith.constant 0 : index
    %c0_79 = arith.constant 0 : index
    %88 = vector.load %arg10[%c0_78, %c0_79] : memref<8x4xf32, #tpu.memory_space<vmem>>, vector<8x4xf32>
    %cst_80 = arith.constant dense<0.000000e+00> : vector<96x4xf32>
    %89 = tpu.matmul %87, %88, %cst_80 {dimension_numbers = #tpu.dot_dimension_numbers<[1], [0], [0], [1], [0, 0, 1, 1], [], []>} : vector<96x8xf32>, vector<8x4xf32>, vector<96x4xf32> -> vector<96x4xf32>
    %c0_81 = arith.constant 0 : index
    %c0_82 = arith.constant 0 : index
    %90 = vector.load %arg11[%c0_81, %c0_82] : memref<1x4xf32, #tpu.memory_space<vmem>>, vector<1x4xf32>
    %91 = vector.broadcast %90 : vector<1x4xf32> to vector<96x4xf32>
    %92 = arith.addf %89, %91 : vector<96x4xf32>
    %c0_83 = arith.constant 0 : index
    %c0_84 = arith.constant 0 : index
    %c0_85 = arith.constant 0 : index
    %93 = vector.load %arg3[%c0_83, %c0_84, %c0_85] : memref<1x96x4xf32, #tpu.memory_space<vmem>>, vector<1x96x4xf32>
    %94 = vector.shape_cast %93 : vector<1x96x4xf32> to vector<96x4xf32>
    %95 = arith.addf %92, %94 : vector<96x4xf32>
    %c0_86 = arith.constant 0 : index
    %c0_87 = arith.constant 0 : index
    %96 = vector.load %arg12[%c0_86, %c0_87] : memref<4x8xf32, #tpu.memory_space<vmem>>, vector<4x8xf32>
    %cst_88 = arith.constant dense<0.000000e+00> : vector<96x8xf32>
    %97 = tpu.matmul %95, %96, %cst_88 {dimension_numbers = #tpu.dot_dimension_numbers<[1], [0], [0], [1], [0, 0, 1, 1], [], []>} : vector<96x4xf32>, vector<4x8xf32>, vector<96x8xf32> -> vector<96x8xf32>
    %c0_89 = arith.constant 0 : index
    %c0_90 = arith.constant 0 : index
    %98 = vector.load %arg13[%c0_89, %c0_90] : memref<1x8xf32, #tpu.memory_space<vmem>>, vector<1x8xf32>
    %99 = vector.broadcast %98 : vector<1x8xf32> to vector<96x8xf32>
    %100 = arith.addf %97, %99 : vector<96x8xf32>
    %c0_91 = arith.constant 0 : index
    %c0_92 = arith.constant 0 : index
    %c0_93 = arith.constant 0 : index
    %101 = vector.load %arg14[%c0_91, %c0_92, %c0_93] : memref<1x96x8xf32, #tpu.memory_space<vmem>>, vector<1x96x8xf32>
    %102 = vector.shape_cast %101 : vector<1x96x8xf32> to vector<96x8xf32>
    %103 = vector.shape_cast %100 : vector<96x8xf32> to vector<1x96x8xf32>
    tpu.vector_store %arg14[%c0_91, %c0_92, %c0_93], %103 {strides = array<i32>} : memref<1x96x8xf32, #tpu.memory_space<vmem>>, vector<1x96x8xf32>,
    return
  }
  func.func @transform_0(%arg0: i32, %arg1: i32) -> (i32, i32, i32) {
    %c4_i32 = arith.constant 4 : i32
    %0 = arith.muli %arg1, %c4_i32 : i32
    %c1_i32 = arith.constant 1 : i32
    %1 = arith.subi %0, %c1_i32 : i32
    %c0_i32 = arith.constant 0 : i32
    %2 = arith.maxsi %1, %c0_i32 : i32
    %c0_i32_0 = arith.constant 0 : i32
    %c0_i32_1 = arith.constant 0 : i32
    return %arg0, %2, %c0_i32_0 : i32, i32, i32
  }
  func.func @transform_1(%arg0: i32, %arg1: i32) -> (i32, i32, i32) {
    %c0_i32 = arith.constant 0 : i32
    %c0_i32_0 = arith.constant 0 : i32
    return %arg0, %arg1, %c0_i32 : i32, i32, i32
  }
  func.func @transform_2(%arg0: i32, %arg1: i32) -> (i32, i32, i32) {
    %c1_i32 = arith.constant 1 : i32
    %0 = arith.addi %arg1, %c1_i32 : i32
    %c4_i32 = arith.constant 4 : i32
    %1 = arith.muli %0, %c4_i32 : i32
    %c0_i32 = arith.constant 0 : i32
    %c0_i32_0 = arith.constant 0 : i32
    return %arg0, %1, %c0_i32 : i32, i32, i32
  }
  func.func @transform_3(%arg0: i32, %arg1: i32) -> (i32, i32) {
    %c0_i32 = arith.constant 0 : i32
    %c0_i32_0 = arith.constant 0 : i32
    %c0_i32_1 = arith.constant 0 : i32
    return %c0_i32, %c0_i32_0 : i32, i32
  }
  func.func @transform_4(%arg0: i32, %arg1: i32) -> (i32, i32) {
    %c0_i32 = arith.constant 0 : i32
    %c0_i32_0 = arith.constant 0 : i32
    %c0_i32_1 = arith.constant 0 : i32
    return %c0_i32, %c0_i32_0 : i32, i32
  }
  func.func @transform_5(%arg0: i32, %arg1: i32) -> (i32, i32) {
    %c0_i32 = arith.constant 0 : i32
    %c0_i32_0 = arith.constant 0 : i32
    %c0_i32_1 = arith.constant 0 : i32
    return %c0_i32, %c0_i32_0 : i32, i32
  }
  func.func @transform_6(%arg0: i32, %arg1: i32) -> (i32, i32, i32) {
    %c0_i32 = arith.constant 0 : i32
    %c0_i32_0 = arith.constant 0 : i32
    %c0_i32_1 = arith.constant 0 : i32
    %c0_i32_2 = arith.constant 0 : i32
    return %c0_i32, %c0_i32_0, %c0_i32_1 : i32, i32, i32
  }
  func.func @transform_7(%arg0: i32, %arg1: i32) -> (i32, i32) {
    %c0_i32 = arith.constant 0 : i32
    %c0_i32_0 = arith.constant 0 : i32
    %c0_i32_1 = arith.constant 0 : i32
    return %c0_i32, %c0_i32_0 : i32, i32
  }
  func.func @transform_8(%arg0: i32, %arg1: i32) -> (i32, i32) {
    %c0_i32 = arith.constant 0 : i32
    %c0_i32_0 = arith.constant 0 : i32
    %c0_i32_1 = arith.constant 0 : i32
    return %c0_i32, %c0_i32_0 : i32, i32
  }
  func.func @transform_9(%arg0: i32, %arg1: i32) -> (i32, i32) {
    %c0_i32 = arith.constant 0 : i32
    %c0_i32_0 = arith.constant 0 : i32
    %c0_i32_1 = arith.constant 0 : i32
    return %c0_i32, %c0_i32_0 : i32, i32
  }
  func.func @transform_10(%arg0: i32, %arg1: i32) -> (i32, i32) {
    %c0_i32 = arith.constant 0 : i32
    %c0_i32_0 = arith.constant 0 : i32
    %c0_i32_1 = arith.constant 0 : i32
    return %c0_i32, %c0_i32_0 : i32, i32
  }
  func.func @transform_11(%arg0: i32, %arg1: i32) -> (i32, i32) {
    %c0_i32 = arith.constant 0 : i32
    %c0_i32_0 = arith.constant 0 : i32
    %c0_i32_1 = arith.constant 0 : i32
    return %c0_i32, %c0_i32_0 : i32, i32
  }
  func.func @transform_12(%arg0: i32, %arg1: i32) -> (i32, i32, i32) {
    %c0_i32 = arith.constant 0 : i32
    %c0_i32_0 = arith.constant 0 : i32
    return %arg0, %arg1, %c0_i32 : i32, i32, i32
  }
}

</mosaic_0001>

<bundles_post_ra>
// kernel: tpu_custom_call.1
= control target key start
LH: loop header
LB: loop body
LE: loop exit
PB: predicated region body
PF: predicated region fallthrough
CT: control target
= control target key end

     0   :  { %s4084_s21 = smov 0   ;;  %s4086_s22 = smov 0   ;;  %s4868_s0 = inlined_call_operand.vmem [shape: f32[2,408,4], index: 0, kind: input, shape index: {}]   ;;  %s4869_s1 = inlined_call_operand.vmem [shape: f32[2,408,4], index: 1, kind: input, shape index: {}]   ;;  %s4870_s2 = inlined_call_operand.vmem [shape: f32[2,408,4], index: 2, kind: input, shape index: {}]   ;;  %s4871_s3 = inlined_call_operand.vmem [shape: f32[96,1], index: 3, kind: input, shape index: {}]   ;;  %s4872_s4 = inlined_call_operand.vmem [shape: f32[4,8], index: 4, kind: input, shape index: {}]   ;;  %s4873_s5 = inlined_call_operand.vmem [shape: f32[1,8], index: 5, kind: input, shape index: {}]   ;;  %s4874_s6 = inlined_call_operand.vmem [shape: f32[9,8,8], index: 6, kind: input, shape index: {}]   ;;  %s4875_s7 = inlined_call_operand.vmem [shape: f32[1,8], index: 7, kind: input, shape index: {}]   ;;  %s4876_s8 = inlined_call_operand.vmem [shape: f32[8,4], index: 8, kind: input, shape index: {}]   ;;  %s4877_s9 = inlined_call_operand.vmem [shape: f32[1,4], index: 9, kind: input, shape index: {}]   ;;  %s4878_s10 = inlined_call_operand.vmem [shape: f32[4,8], index: 10, kind: input, shape index: {}]   ;;  %s4879_s11 = inlined_call_operand.vmem [shape: f32[1,8], index: 11, kind: input, shape index: {}]   ;;  %s4880_s12 = inlined_call_operand.vmem [shape: f32[2,384,8], index: 12, kind: output, shape index: {}]  }
   0x1   :  { %4882 = sst [smem:[#allocation31_spill]] %s4868_s0  ;;  %s4088_s23 = smov 0  }
   0x2   :  { %4883 = sst [smem:[#allocation32_spill]] %s4869_s1  ;;  %s4090_s24 = smov 0  }
   0x3   :  { %4884 = sst [smem:[#allocation33_spill]] %s4872_s4  ;;  %s4092_s25 = smov 0  }
   0x4 LB: > { %4885 = sst [smem:[#allocation3_spill]] %s4008_s24  ;;  %s31_s26 = sadd.s32 1, %s4004_s23  ;;  %s4012_s25 = sphi %s4092_s25, %s22_s25   ;;  %s4008_s24 = sphi %s4090_s24, %s4943_s24   ;;  %s4004_s23 = sphi %s4088_s23, %s4945_s23   ;;  %s4000_s22 = sphi %s4086_s22, %s4941_s22   ;;  %s3996_s21 = sphi %s4084_s21, %s4944_s21  }
   0x5   : > { %s34_s27 = sadd.s32 1, %s4008_s24  ;;  %p32_p0 = scmp.ge.s32.totalorder %s31_s26, 4 }
   0x6   : > { %p3312_p1 = scmp.ge.s32.totalorder %s4012_s25, 1  ;;  %p449_p2 = scmp.lt.s32.totalorder %s4012_s25, 9 }
   0x7   : > { %s4947_s26 = smov (%p32_p0, %s31_s26), 0  ;;  %s4949_s27 = smov (!%p32_p0, %s34_s27), %s4008_s24 }
   0x8   : > { %4886 = sst [smem:[#allocation4_spill]] %s4947_s26  ;;  %p450_p3 = pnand %p3312_p1, %p449_p2 }
   0x9   : > { %p36_p4 = scmp.ge.s32.totalorder %s4949_s27, 2 }
   0xa   : > { %453 = sbr.rel (%p450_p3) target bundleno = 994 (0x3e2), region = 68 }
   0xb   : > { %s4951_s27 = smov (%p36_p4, %s4949_s27), 0 }
   0xc   : > { %4887 = sst [smem:[#allocation5_spill]] %s4951_s27 }
   0xf   : > { %vm590_vm0 = vcmask 64512   ;;  %s4888_s4 = sld [smem:[#allocation33_spill]]  ;;  %vm614_vm1 = vcmask 1043456   ;;  %v4014_v1 = vmov 0.0   ;;  %vm4015_vm2 = vmmov 0   ;;  %s3313_s14 = sshll.u32 %s3996_s21, 2 }
  0x10   : > { %591 = vst.msk [vmem:[#allocation2] sm:$0xff] %vm590_vm0, %v4014_v1  ;;  %592 = vst.msk [vmem:[#allocation2 + $0x98] sm:$0xff] %vm590_vm0, %v4014_v1  ;;  %3663 = vmatprep.subr.mxu1 %v4014_v1  ;;  %3665 = vmatprep.mubr.msk.f32.mxu1 %vm4015_vm2, %v4014_v1  ;;  %p532_p5 = scmp.lt.s32.totalorder %s4000_s22, 1  ;;  %s3314_s15 = sadd.s32 4294967295, %s3313_s14  ;;  %v587_v4 = vld [vmem:[%s4871_s3] sm:$0xff]  ;;  %v589_v5 = vld [vmem:[%s4871_s3 + $0x10] sm:$0xff] }
  0x11   : > { %s4135_s16 = smul.u32 12, %s3996_s21  ;;  %3694 = vmatprep.subr.mxu0 %v4014_v1  ;;  %p529_p6 = scmp.gt.s32.totalorder %s3314_s15, 0  ;;  %3696 = vmatprep.mubr.msk.f32.mxu0 %vm4015_vm2, %v4014_v1  ;;  %v4016_v6 = vmov 0   ;;  %v588_v7 = vld [vmem:[%s4871_s3 + $0x8] sm:$0xff]  ;;  %vm604_vm3 = vcmask 31744   ;;  %v722_v8 = vld [vmem:[%s4871_s3 + $0x18] sm:$0xff] }
  0x12   : > { %s4953_s22 = smov (!%p532_p5, %s4000_s22), 1  ;;  %3972 = vset.pattern.permute.xlu0 %v4016_v6  ;;  %3973 = vset.pattern.permute.xlu1 %v4016_v6  ;;  %s563_s17 = sadd.s32 1, %s3996_s21  ;;  %v723_v10 = vld [vmem:[%s4871_s3 + $0x20] sm:$0xff]  ;;  %v724_v12 = vld [vmem:[%s4871_s3 + $0x28] sm:$0xff]  ;;  %v725_v13 = vld [vmem:[%s4871_s3 + $0x30] sm:$0xff] }
  0x13   : > { %s4955_s15 = smov (!%p529_p6, %s3314_s15), 0  ;;  %700 = vperm.xlu0 %3972, %v587_v4   ;;  %p552_p7 = scmp.lt.s32.totalorder %s4135_s16, 50  ;;  %710 = vperm.xlu1 %3973, %v589_v5   ;;  %v726_v16 = vld [vmem:[%s4871_s3 + $0x38] sm:$0xff]  ;;  %v727_v19 = vld [vmem:[%s4871_s3 + $0x40] sm:$0xff]  ;;  %v728_v21 = vld [vmem:[%s4871_s3 + $0x48] sm:$0xff] }
  0x14   : > { %s531_s14 = smul.u32 3, %s4955_s15  ;;  %p580_p9 = scmp.lt.s32.totalorder %s4135_s16, 47  ;;  %v729_v24 = vld [vmem:[%s4871_s3 + $0x50] sm:$0xff]  ;;  %v730_v26 = vld [vmem:[%s4871_s3 + $0x58] sm:$0xff]  ;;  %v4254_v37 = vld [vmem:[%s4873_s5] ss:$0 sm:$0xff] }
  0x15   : > { %v596_v0 = vld [vmem:[%s4888_s4] sm:$0xf]  ;;  %s553_s18 = scalar_select %p552_p7, %s4135_s16, 50 }
  0x16   : > { %v743_v2 = vld [vmem:[%s4888_s4] sm:$0xf]  ;;  %3664 = vmatpush3.msk.msra.mxu1 %vm614_vm1, %v596_v0  ;;  %p534_p8 = scmp.lt.s32.totalorder %s531_s14, 50  ;;  %s4161_s19 = smul.u32 51, %s4953_s22 }
  0x17   : > { %v1002_v3 = vld [vmem:[%s4888_s4] sm:$0xf]  ;;  %3674 = vmatprep.subr.msk.mxu1 %vm614_vm1, %v743_v2  ;;  %705 = vperm.xlu0 %3972, %v588_v7   ;;  %s3318_s20 = smul.u32 12, %s563_s17  ;;  %s4889_s0 = sld [smem:[#allocation31_spill]] }
  0x18   : > { %3695 = vmatpush3.msk.msra.mxu0 %vm614_vm1, %v1002_v3  ;;  %917 = vperm.xlu1 %3973, %v587_v4   ;;  %s4957_s14 = smov (!%p534_p8, %s531_s14), 50  ;;  %s555_s28 = sadd.s32 %s4161_s19, %s553_s18 }
  0x19   : > { %s537_s29 = sadd.s32 %s4161_s19, %s4957_s14  ;;  %p568_p10 = scmp.lt.s32.totalorder %s3318_s20, 50 }
  0x1a   : > { %s3315_s30 = sshll.u32 %s537_s29, 3  ;;  %s3926_s13 = smul.u32 48, %s4953_s22 }
  0x1b   : > { %922 = vperm.xlu0 %3972, %v588_v7   ;;  %s3316_s24 = sshll.u32 %s555_s28, 3  ;;  %s4959_s16 = smov (!%p580_p9, %s4135_s16), 47 }
  0x1c   : > { %927 = vperm.xlu1 %3973, %v589_v5   ;;  %s4961_s20 = smov (!%p568_p10, %s3318_s20), 50  ;;  %s4890_s1 = sld [smem:[#allocation32_spill]] }
  0x1d   : > { %s539_s17 = scalar_lea.vmem %s4889_s0, %s3315_s30  ;;  %s583_s15 = sadd.s32 %s3926_s13, %s4959_s16 }
  0x1e   : > { %v593_v9 = vld [vmem:[%s539_s17] sm:$0xff]  ;;  %v594_v11 = vld [vmem:[%s539_s17 + $0x8] sm:$0xff]  ;;  %s3320_s28 = sshll.u32 %s583_s15, 3  ;;  %s571_s30 = sadd.s32 %s4161_s19, %s4961_s20  ;;  %v595_v15 = vld [vmem:[%s539_s17 + $0x10] sm:$0xff] }
  0x1f   : > { %3666 = vmatmul.mubr.msk.f32.vlgmr.msra.gmra.mxu1 %vm604_vm3, %v593_v9  ;;  %932 = vperm.xlu0 %3972, %v722_v8   ;;  %s3319_s16 = sshll.u32 %s571_s30, 3  ;;  %p3345_p11 = scmp.ne.s32.totalorder %s3996_s21, 0 }
  0x20   : > { %3675 = vmatpush3.msk.msra.mxu1 %vm614_vm1, %v743_v2  ;;  %3668 = vmatprep.mubr.msk.f32.mxu1 %vm4015_vm2, %v4014_v1 }
  0x21   : > { %937 = vperm.xlu1 %3973, %v723_v10  }
  0x22   : > { %s4181_s29 = scalar_lea.vmem %s4890_s1, %s3316_s24  ;;  %s4193_s24 = scalar_lea.vmem %s4880_s12, %s3320_s28 }
  0x23   : > { %s573_s1 = scalar_lea.vmem %s4870_s2, %s3319_s16  ;;  %3669 = vmatmul.mubr.msk.f32.gmra.mxu1 %vm604_vm3, %v594_v11  ;;  %942 = vperm.xlu0 %3972, %v724_v12   ;;  %v731_v17 = vld [vmem:[%s4181_s29] sm:$0xff]  ;;  %v732_v20 = vld [vmem:[%s4181_s29 + $0x8] sm:$0xff]  ;;  %v733_v22 = vld [vmem:[%s4181_s29 + $0x10] sm:$0xff] }
  0x24   : > { %v999_v14 = vld [vmem:[%s573_s1] sm:$0xff]  ;;  %3671 = vmatprep.mubr.msk.f32.mxu1 %vm4015_vm2, %v4014_v1  ;;  %v1000_v18 = vld [vmem:[%s573_s1 + $0x8] sm:$0xff]  ;;  %v1001_v23 = vld [vmem:[%s573_s1 + $0x10] sm:$0xff] }
  0x25   : > { %3697 = vmatmul.mubr.msk.f32.vlgmr.msra.gmra.mxu0 %vm604_vm3, %v999_v14  ;;  %947 = vperm.xlu1 %3973, %v725_v13   ;;  %v734_v25 = vld [vmem:[%s4181_s29 + $0x18] sm:$0xff]  ;;  %v735_v27 = vld [vmem:[%s4181_s29 + $0x20] sm:$0xff]  ;;  %v736_v28 = vld [vmem:[%s4181_s29 + $0x28] sm:$0xff] }
  0x26   : > { %3699 = vmatprep.mubr.msk.f32.mxu0 %vm4015_vm2, %v4014_v1  ;;  %v737_v29 = vld [vmem:[%s4181_s29 + $0x30] sm:$0xff]  ;;  %v738_v30 = vld [vmem:[%s4181_s29 + $0x38] sm:$0xff]  ;;  %v739_v31 = vld [vmem:[%s4181_s29 + $0x40] sm:$0xff] }
  0x27   : > { %3672 = vmatmul.mubr.msk.f32.gmra.mxu1 %vm604_vm3, %v595_v15  ;;  %952 = vperm.xlu0 %3972, %v726_v16   ;;  %v740_v32 = vld [vmem:[%s4181_s29 + $0x48] sm:$0xff]  ;;  %v741_v33 = vld [vmem:[%s4181_s29 + $0x50] sm:$0xff]  ;;  %v742_v34 = vld [vmem:[%s4181_s29 + $0x58] sm:$0xff] }
  0x28   : > { %3676 = vmatprep.mubr.msk.f32.mxu1 %vm604_vm3, %v731_v17 }
  0x29   : > { %3700 = vmatmul.mubr.msk.f32.gmra.mxu0 %vm604_vm3, %v1000_v18  ;;  %957 = vperm.xlu1 %3973, %v727_v19  }
  0x2a   : > { %3702 = vmatprep.mubr.msk.f32.mxu0 %vm4015_vm2, %v4014_v1 }
  0x2b   : > { %3677 = vmatmul.mubr.msk.f32.vlgmr.msra.gmra.mxu1 %vm604_vm3, %v732_v20  ;;  %962 = vperm.xlu0 %3972, %v728_v21  }
  0x2c   : > { %3679 = vmatprep.mubr.msk.f32.mxu1 %vm604_vm3, %v733_v22 }
  0x2d   : > { %3703 = vmatmul.mubr.msk.f32.gmra.mxu0 %vm604_vm3, %v1001_v23  ;;  %967 = vperm.xlu1 %3973, %v729_v24  }
  0x2f   : > { %3680 = vmatmul.mubr.msk.f32.gmra.mxu1 %vm604_vm3, %v734_v25  ;;  %972 = vperm.xlu0 %3972, %v730_v26  }
  0x30   : > { %3682 = vmatprep.mubr.msk.f32.mxu1 %vm604_vm3, %v735_v27 }
  0x33   : > { %3683 = vmatmul.mubr.msk.f32.gmra.mxu1 %vm604_vm3, %v736_v28 }
  0x34   : > { %3685 = vmatprep.mubr.msk.f32.mxu1 %vm604_vm3, %v737_v29 }
  0x37   : > { %3686 = vmatmul.mubr.msk.f32.gmra.mxu1 %vm604_vm3, %v738_v30 }
  0x38   : > { %3688 = vmatprep.mubr.msk.f32.mxu1 %vm604_vm3, %v739_v31 }
  0x3b   : > { %3689 = vmatmul.mubr.msk.f32.gmra.mxu1 %vm604_vm3, %v740_v32 }
  0x3c   : > { %3691 = vmatprep.mubr.msk.f32.mxu1 %vm604_vm3, %v741_v33 }
  0x3f   : > { %3692 = vmatmul.mubr.msk.f32.gmra.mxu1 %vm604_vm3, %v742_v34 }
  0x8e   : > { %v701_v35 = vpop.permute.xlu0 %700  ;;  %v711_v38 = vpop.permute.xlu1 %710 }
  0x92   : > { %v706_v36 = vpop.permute.xlu0 %705 }
  0x93   : > { %v918_v45 = vpop.permute.xlu1 %917 }
  0x96   : > { %v923_v42 = vpop.permute.xlu0 %922 }
  0x97   : > { %v928_v58 = vpop.permute.xlu1 %927 }
  0x9a   : > { %v933_v53 = vpop.permute.xlu0 %932 }
  0x9c   : > { %v938_v12 = vpop.permute.xlu1 %937 }
  0x9e   : > { %v943_v3 = vpop.permute.xlu0 %942 }
  0xa0   : > { %v948_v23 = vpop.permute.xlu1 %947 }
  0xa2   : > { %v953_v19 = vpop.permute.xlu0 %952 }
  0xa4   : > { %v958_v34 = vpop.permute.xlu1 %957 }
  0xa6   : > { %v963_v30 = vpop.permute.xlu0 %962 }
  0xdf   : > { %v684_v39 = vpop.f32.mrf.mxu1 }
  0xe0   : > { %v685_v40 = vadd.f32 %v4254_v37, %v684_v39 }
  0xe1   : > { %v3667_v41 = vpop.f32.mrf.mxu1 }
  0xe2   : > { %v713_v43 = vmul.f32 %v701_v35, %v685_v40 }
  0xe3   : > { %v689_v44 = vpop.f32.mrf.mxu1 }
  0xe4   : > { %716 = vst.msk [vmem:[#allocation2 + $0x8] sm:$0xff] %vm590_vm0, %v713_v43  ;;  %v690_v46 = vadd.f32 %v4254_v37, %v689_v44 }
  0xe5   : > { %v1088_v47 = vpop.f32.mrf.mxu0  ;;  %v3670_v48 = vpop.f32.mrf.mxu1 }
  0xe6   : > { %v1089_v49 = vadd.f32 %v4254_v37, %v1088_v47  ;;  %v714_v50 = vmul.f32 %v706_v36, %v690_v46  ;;  %v968_v46 = vpop.permute.xlu1 %967 }
  0xe7   : > { %v3698_v51 = vpop.f32.mrf.mxu0  ;;  %v694_v52 = vpop.f32.mrf.mxu1 }
  0xe8   : > { %v1102_v54 = vmul.f32 %v1089_v49, %v701_v35  ;;  %717 = vst.msk [vmem:[#allocation2 + $0x10] sm:$0xff] %vm590_vm0, %v714_v50  ;;  %v695_v55 = vadd.f32 %v4254_v37, %v694_v52 }
  0xe9   : > { %v1093_v56 = vpop.f32.mrf.mxu0  ;;  %v3673_v57 = vpop.f32.mrf.mxu1 }
  0xea   : > { %1105 = vst.msk [vmem:[#allocation2 + $0x80] sm:$0xff] %vm590_vm0, %v1102_v54  ;;  %v1094_v59 = vadd.f32 %v4254_v37, %v1093_v56  ;;  %v715_v60 = vmul.f32 %v711_v38, %v695_v55 }
  0xeb   : > { %v3701_v61 = vpop.f32.mrf.mxu0  ;;  %v3678_v62 = vpop.f32.mrf.mxu1 }
  0xec   : > { %v1103_v63 = vmul.f32 %v1094_v59, %v706_v36  ;;  %718 = vst.msk [vmem:[#allocation2 + $0x18] sm:$0xff] %vm590_vm0, %v715_v60  ;;  %v862_v0 = vadd.f32 %v3678_v62, %v4254_v37 }
  0xed   : > { %v1098_v1 = vpop.f32.mrf.mxu0  ;;  %v856_v2 = vpop.f32.mrf.mxu1 }
  0xee   : > { %1106 = vst.msk [vmem:[#allocation2 + $0x88] sm:$0xff] %vm590_vm0, %v1103_v63  ;;  %v1099_v4 = vadd.f32 %v4254_v37, %v1098_v1  ;;  %v976_v5 = vmul.f32 %v923_v42, %v862_v0  ;;  %v857_v6 = vadd.f32 %v4254_v37, %v856_v2  ;;  %v973_v42 = vpop.permute.xlu0 %972 }
  0xef   : > { %v3681_v7 = vpop.f32.mrf.mxu1  ;;  %v3704_v8 = vpop.f32.mrf.mxu0 }
  0xf0   : > { %v1104_v9 = vmul.f32 %v1099_v4, %v711_v38  ;;  %988 = vst.msk [vmem:[#allocation2 + $0x28] sm:$0xff] %vm590_vm0, %v976_v5  ;;  %v975_v10 = vmul.f32 %v918_v45, %v857_v6  ;;  %v872_v11 = vadd.f32 %v3681_v7, %v4254_v37 }
  0xf1   : > { %v866_v13 = vpop.f32.mrf.mxu1 }
  0xf2   : > { %1107 = vst.msk [vmem:[#allocation2 + $0x90] sm:$0xff] %vm590_vm0, %v1104_v9  ;;  %987 = vst.msk [vmem:[#allocation2 + $0x20] sm:$0xff] %vm590_vm0, %v975_v10  ;;  %v978_v14 = vmul.f32 %v933_v53, %v872_v11  ;;  %v867_v15 = vadd.f32 %v4254_v37, %v866_v13 }
  0xf3   : > { %v3684_v16 = vpop.f32.mrf.mxu1 }
  0xf4   : > { %990 = vst.msk [vmem:[#allocation2 + $0x38] sm:$0xff] %vm590_vm0, %v978_v14  ;;  %v977_v17 = vmul.f32 %v928_v58, %v867_v15  ;;  %v882_v18 = vadd.f32 %v3684_v16, %v4254_v37 }
  0xf5   : > { %v876_v20 = vpop.f32.mrf.mxu1 }
  0xf6   : > { %989 = vst.msk [vmem:[#allocation2 + $0x30] sm:$0xff] %vm590_vm0, %v977_v17  ;;  %v980_v21 = vmul.f32 %v943_v3, %v882_v18  ;;  %v877_v22 = vadd.f32 %v4254_v37, %v876_v20 }
  0xf7   : > { %v3687_v24 = vpop.f32.mrf.mxu1 }
  0xf8   : > { %992 = vst.msk [vmem:[#allocation2 + $0x48] sm:$0xff] %vm590_vm0, %v980_v21  ;;  %v979_v25 = vmul.f32 %v938_v12, %v877_v22  ;;  %v892_v26 = vadd.f32 %v3687_v24, %v4254_v37 }
  0xf9   : > { %v886_v27 = vpop.f32.mrf.mxu1 }
  0xfa   : > { %991 = vst.msk [vmem:[#allocation2 + $0x40] sm:$0xff] %vm590_vm0, %v979_v25  ;;  %v982_v28 = vmul.f32 %v953_v19, %v892_v26  ;;  %v887_v29 = vadd.f32 %v4254_v37, %v886_v27 }
  0xfb   : > { %v3690_v31 = vpop.f32.mrf.mxu1 }
  0xfc   : > { %994 = vst.msk [vmem:[#allocation2 + $0x58] sm:$0xff] %vm590_vm0, %v982_v28  ;;  %v981_v32 = vmul.f32 %v948_v23, %v887_v29  ;;  %v902_v33 = vadd.f32 %v3690_v31, %v4254_v37 }
  0xfd   : > { %v896_v35 = vpop.f32.mrf.mxu1 }
  0xfe   : > { %993 = vst.msk [vmem:[#allocation2 + $0x50] sm:$0xff] %vm590_vm0, %v981_v32  ;;  %v984_v36 = vmul.f32 %v963_v30, %v902_v33  ;;  %v897_v38 = vadd.f32 %v4254_v37, %v896_v35 }
  0xff   : > { %v3693_v39 = vpop.f32.mrf.mxu1 }
 0x100   : > { %996 = vst.msk [vmem:[#allocation2 + $0x68] sm:$0xff] %vm590_vm0, %v984_v36  ;;  %v983_v40 = vmul.f32 %v958_v34, %v897_v38  ;;  %v912_v41 = vadd.f32 %v3693_v39, %v4254_v37 }
 0x101   : > { %v906_v43 = vpop.f32.mrf.mxu1 }
 0x102   : > { %995 = vst.msk [vmem:[#allocation2 + $0x60] sm:$0xff] %vm590_vm0, %v983_v40  ;;  %v986_v44 = vmul.f32 %v973_v42, %v912_v41  ;;  %v907_v45 = vadd.f32 %v4254_v37, %v906_v43  ;;  %1111 = sbr.rel (%p3345_p11) target bundleno = 266 (0x10a), region = 72 }
 0x104   : > { %998 = vst.msk [vmem:[#allocation2 + $0x78] sm:$0xff] %vm590_vm0, %v986_v44  ;;  %v985_v47 = vmul.f32 %v968_v46, %v907_v45 }
 0x106   : > { %997 = vst.msk [vmem:[#allocation2 + $0x70] sm:$0xff] %vm590_vm0, %v985_v47 }
 0x107   : > { %v4017_v48 = vmov 0.0  }
 0x108   : > { %1112 = vst.msk [vmem:[#allocation2 + $0x8] sm:$0xff] %vm590_vm0, %v4017_v48  ;;  %1113 = vst.msk [vmem:[#allocation2 + $0x10] sm:$0xff] %vm590_vm0, %v4017_v48 }
 0x109   : > { %1114 = vst.msk [vmem:[#allocation2 + $0x18] sm:$0xff] %vm590_vm0, %v4017_v48 }
 0x10a PF: > { %p3346_p12 = scmp.ne.s32.totalorder %s3996_s21, 3 }
 0x10c   : > { %1118 = sbr.rel (%p3346_p12) target bundleno = 276 (0x114), region = 76 }
 0x111   : > { %v4018_v37 = vmov 0.0  }
 0x112   : > { %1119 = vst.msk [vmem:[#allocation2 + $0x80] sm:$0xff] %vm590_vm0, %v4018_v37  ;;  %1120 = vst.msk [vmem:[#allocation2 + $0x88] sm:$0xff] %vm590_vm0, %v4018_v37 }
 0x113   : > { %1121 = vst.msk [vmem:[#allocation2 + $0x90] sm:$0xff] %vm590_vm0, %v4018_v37 }
 0x114 PF: > { %v3347_v49 = vld [vmem:[%s4874_s6 + $0x8] sm:$0xff]  ;;  %v1134_v50 = vld [vmem:[%s4874_s6] sm:$0xff]  ;;  %v1136_v53 = vld [vmem:[#allocation2 + $0x10] sm:$0xff] }
 0x115   : > { %v1135_v51 = vld [vmem:[#allocation2 + $0x8] sm:$0xff]  ;;  %3705 = vmatprep.subr.mxu0 %v3347_v49  ;;  %3725 = vmatprep.subr.mxu1 %v1134_v50  ;;  %v3372_v55 = vld [vmem:[%s4874_s6 + $0x10] sm:$0xff]  ;;  %v1137_v56 = vld [vmem:[#allocation2 + $0x18] sm:$0xff] }
 0x116   : > { %v1122_v52 = vld [vmem:[#allocation2 + $0x7] sm:$0xff]  ;;  %v1123_v54 = vld [vmem:[#allocation2 + $0xf] sm:$0xff]  ;;  %3706 = vmatpush3.msra.mxu0 %v3347_v49  ;;  %3707 = vmatprep.mubr.msk.f32.mxu0 %vm590_vm0, %v1135_v51  ;;  %v1124_v57 = vld [vmem:[#allocation2 + $0x17] sm:$0xff] }
 0x117   : > { %3726 = vmatpush3.msra.mxu1 %v1134_v50  ;;  %3727 = vmatprep.mubr.msk.f32.mxu1 %vm590_vm0, %v1122_v52  ;;  %v4314_v58 = vld [vmem:[#allocation2 + $0x20] sm:$0xff]  ;;  %v4317_v60 = vld [vmem:[#allocation2 + $0x28] sm:$0xff]  ;;  %v4325_v62 = vld [vmem:[#allocation2 + $0x30] sm:$0xff] }
 0x118   : > { %3708 = vmatmul.mubr.msk.f32.vlgmr.msra.gmra.mxu0 %vm590_vm0, %v1136_v53  ;;  %3728 = vmatmul.mubr.msk.f32.vlgmr.msra.gmra.mxu1 %vm590_vm0, %v1123_v54  ;;  %v1125_v59 = vld [vmem:[#allocation2 + $0x1f] sm:$0xff]  ;;  %v1126_v61 = vld [vmem:[#allocation2 + $0x27] sm:$0xff]  ;;  %v1127_v63 = vld [vmem:[#allocation2 + $0x2f] sm:$0xff] }
 0x119   : > { %3745 = vmatprep.subr.mxu0 %v3372_v55  ;;  %3710 = vmatprep.mubr.msk.f32.mxu0 %vm590_vm0, %v1137_v56  ;;  %v3385_v0 = vld [vmem:[%s4874_s6 + $0x18] sm:$0xff]  ;;  %v3398_v3 = vld [vmem:[%s4874_s6 + $0x20] sm:$0xff]  ;;  %v4348_v6 = vld [vmem:[#allocation2 + $0x48] sm:$0xff] }
 0x11a   : > { %3746 = vmatpush3.msra.mxu0 %v3372_v55  ;;  %3730 = vmatprep.mubr.msk.f32.mxu1 %vm590_vm0, %v1124_v57  ;;  %v4330_v1 = vld [vmem:[#allocation2 + $0x38] sm:$0xff]  ;;  %v4344_v4 = vld [vmem:[#allocation2 + $0x40] sm:$0xff]  ;;  %v3411_v8 = vld [vmem:[%s4874_s6 + $0x28] sm:$0xff] }
 0x11b   : > { %v4332_v2 = vld [vmem:[#allocation2 + $0x37] sm:$0xff]  ;;  %3765 = vmatprep.subr.mxu1 %v3385_v0  ;;  %3785 = vmatprep.subr.mxu0 %v3398_v3  ;;  %v4346_v5 = vld [vmem:[#allocation2 + $0x3f] sm:$0xff]  ;;  %v4350_v7 = vld [vmem:[#allocation2 + $0x47] sm:$0xff] }
 0x11c   : > { %3711 = vmatmul.mubr.msk.f32.gmra.mxu0 %vm590_vm0, %v4314_v58  ;;  %3731 = vmatmul.mubr.msk.f32.gmra.mxu1 %vm590_vm0, %v1125_v59  ;;  %v4363_v9 = vld [vmem:[#allocation2 + $0x50] sm:$0xff]  ;;  %v4367_v11 = vld [vmem:[#allocation2 + $0x58] sm:$0xff]  ;;  %v4379_v13 = vld [vmem:[#allocation2 + $0x60] sm:$0xff] }
 0x11d   : > { %3713 = vmatprep.mubr.msk.f32.mxu0 %vm590_vm0, %v4317_v60  ;;  %3733 = vmatprep.mubr.msk.f32.mxu1 %vm590_vm0, %v1126_v61  ;;  %v4365_v10 = vld [vmem:[#allocation2 + $0x4f] sm:$0xff]  ;;  %v4369_v12 = vld [vmem:[#allocation2 + $0x57] sm:$0xff]  ;;  %v4381_v14 = vld [vmem:[#allocation2 + $0x5f] sm:$0xff] }
 0x11e   : > { %3766 = vmatpush3.msra.mxu1 %v3385_v0  ;;  %v1471_v15 = vld [vmem:[#allocation2 + $0x9] sm:$0xff]  ;;  %v1472_v16 = vld [vmem:[#allocation2 + $0x11] sm:$0xff]  ;;  %v1473_v17 = vld [vmem:[#allocation2 + $0x19] sm:$0xff] }
 0x11f   : > { %3805 = vmatprep.subr.mxu1 %v3411_v8  ;;  %v3424_v18 = vld [vmem:[%s4874_s6 + $0x30] sm:$0xff]  ;;  %v3437_v19 = vld [vmem:[%s4874_s6 + $0x38] sm:$0xff]  ;;  %v1474_v20 = vld [vmem:[#allocation2 + $0x21] sm:$0xff] }
 0x120   : > { %3714 = vmatmul.mubr.msk.f32.gmra.mxu0 %vm590_vm0, %v4325_v62  ;;  %3734 = vmatmul.mubr.msk.f32.gmra.mxu1 %vm590_vm0, %v1127_v63  ;;  %v1475_v21 = vld [vmem:[#allocation2 + $0x29] sm:$0xff]  ;;  %v1476_v22 = vld [vmem:[#allocation2 + $0x31] sm:$0xff]  ;;  %v4405_v23 = vld [vmem:[#allocation2 + $0x39] sm:$0xff] }
 0x121   : > { %3716 = vmatprep.mubr.msk.f32.mxu0 %vm590_vm0, %v4330_v1  ;;  %3736 = vmatprep.mubr.msk.f32.mxu1 %vm590_vm0, %v4332_v2  ;;  %v4412_v24 = vld [vmem:[#allocation2 + $0x41] sm:$0xff]  ;;  %v4416_v25 = vld [vmem:[#allocation2 + $0x49] sm:$0xff]  ;;  %v4424_v26 = vld [vmem:[#allocation2 + $0x51] sm:$0xff] }
 0x122   : > { %v1667_v27 = vld [vmem:[#allocation2 + $0x67] sm:$0xff]  ;;  %v4428_v28 = vld [vmem:[#allocation2 + $0x59] sm:$0xff]  ;;  %v1668_v29 = vld [vmem:[#allocation2 + $0x6f] sm:$0xff] }
 0x123   : > { %v4435_v30 = vld [vmem:[#allocation2 + $0x61] sm:$0xff]  ;;  %v1669_v31 = vld [vmem:[#allocation2 + $0x77] sm:$0xff]  ;;  %v2041_v34 = vld [vmem:[#allocation2 + $0x69] sm:$0xff] }
 0x124   : > { %3717 = vmatmul.mubr.msk.f32.gmra.mxu0 %vm590_vm0, %v4344_v4  ;;  %3737 = vmatmul.mubr.msk.f32.gmra.mxu1 %vm590_vm0, %v4346_v5  ;;  %v3450_v32 = vld [vmem:[%s4874_s6 + $0x40] sm:$0xff]  ;;  %v1854_v33 = vld [vmem:[#allocation2 + $0x68] sm:$0xff]  ;;  %v1855_v35 = vld [vmem:[#allocation2 + $0x70] sm:$0xff] }
 0x125   : > { %3719 = vmatprep.mubr.msk.f32.mxu0 %vm590_vm0, %v4348_v6  ;;  %3739 = vmatprep.mubr.msk.f32.mxu1 %vm590_vm0, %v4350_v7  ;;  %v2042_v36 = vld [vmem:[#allocation2 + $0x71] sm:$0xff]  ;;  %v2043_v39 = vld [vmem:[#allocation2 + $0x79] sm:$0xff]  ;;  %v2229_v42 = vld [vmem:[#allocation2 + $0x87] sm:$0xff] }
 0x126   : > { %v1856_v38 = vld [vmem:[#allocation2 + $0x78] sm:$0xff]  ;;  %v2415_v41 = vld [vmem:[#allocation2 + $0x80] sm:$0xff]  ;;  %v2416_v43 = vld [vmem:[#allocation2 + $0x88] sm:$0xff] }
 0x127   : > { %v2228_v40 = vld [vmem:[#allocation2 + $0x7f] sm:$0xff]  ;;  %v2230_v44 = vld [vmem:[#allocation2 + $0x8f] sm:$0xff] }
 0x128   : > { %3720 = vmatmul.mubr.msk.f32.gmra.mxu0 %vm590_vm0, %v4363_v9  ;;  %3740 = vmatmul.mubr.msk.f32.gmra.mxu1 %vm590_vm0, %v4365_v10  ;;  %v2417_v45 = vld [vmem:[#allocation2 + $0x90] sm:$0xff]  ;;  %v2602_v46 = vld [vmem:[#allocation2 + $0x81] sm:$0xff] }
 0x129   : > { %3722 = vmatprep.mubr.msk.f32.mxu0 %vm590_vm0, %v4367_v11  ;;  %3742 = vmatprep.mubr.msk.f32.mxu1 %vm590_vm0, %v4369_v12  ;;  %v2603_v47 = vld [vmem:[#allocation2 + $0x89] sm:$0xff]  ;;  %v2604_v48 = vld [vmem:[#allocation2 + $0x91] sm:$0xff]  ;;  %v2799_v37 = vld [vmem:[%s4876_s8] sm:$0xff] }
 0x12a   : > { %v2992_v49 = vld [vmem:[%s4878_s10] sm:$0xf] }
 0x12c   : > { %3723 = vmatmul.mubr.msk.f32.gmra.mxu0 %vm590_vm0, %v4379_v13  ;;  %3743 = vmatmul.mubr.msk.f32.gmra.mxu1 %vm590_vm0, %v4381_v14 }
 0x12d   : > { %3747 = vmatprep.mubr.msk.f32.mxu0 %vm590_vm0, %v1471_v15  ;;  %3767 = vmatprep.mubr.msk.f32.mxu1 %vm590_vm0, %v1125_v59 }
 0x130   : > { %3748 = vmatmul.mubr.msk.f32.vlgmr.msra.gmra.mxu0 %vm590_vm0, %v1472_v16  ;;  %3768 = vmatmul.mubr.msk.f32.vlgmr.msra.gmra.mxu1 %vm590_vm0, %v1126_v61 }
 0x131   : > { %3786 = vmatpush3.msra.mxu0 %v3398_v3  ;;  %3750 = vmatprep.mubr.msk.f32.mxu0 %vm590_vm0, %v1473_v17 }
 0x132   : > { %3770 = vmatprep.mubr.msk.f32.mxu1 %vm590_vm0, %v1127_v63  ;;  %3806 = vmatpush3.msra.mxu1 %v3411_v8 }
 0x133   : > { %3825 = vmatprep.subr.mxu0 %v3424_v18  ;;  %3845 = vmatprep.subr.mxu1 %v3437_v19 }
 0x134   : > { %3751 = vmatmul.mubr.msk.f32.gmra.mxu0 %vm590_vm0, %v1474_v20  ;;  %3771 = vmatmul.mubr.msk.f32.gmra.mxu1 %vm590_vm0, %v4332_v2 }
 0x135   : > { %3753 = vmatprep.mubr.msk.f32.mxu0 %vm590_vm0, %v1475_v21  ;;  %3773 = vmatprep.mubr.msk.f32.mxu1 %vm590_vm0, %v4346_v5 }
 0x138   : > { %3754 = vmatmul.mubr.msk.f32.gmra.mxu0 %vm590_vm0, %v1476_v22  ;;  %3774 = vmatmul.mubr.msk.f32.gmra.mxu1 %vm590_vm0, %v4350_v7 }
 0x139   : > { %3756 = vmatprep.mubr.msk.f32.mxu0 %vm590_vm0, %v4405_v23  ;;  %3776 = vmatprep.mubr.msk.f32.mxu1 %vm590_vm0, %v4365_v10 }
 0x13c   : > { %3757 = vmatmul.mubr.msk.f32.gmra.mxu0 %vm590_vm0, %v4412_v24  ;;  %3777 = vmatmul.mubr.msk.f32.gmra.mxu1 %vm590_vm0, %v4369_v12 }
 0x13d   : > { %3759 = vmatprep.mubr.msk.f32.mxu0 %vm590_vm0, %v4416_v25  ;;  %3779 = vmatprep.mubr.msk.f32.mxu1 %vm590_vm0, %v4381_v14 }
 0x140   : > { %3760 = vmatmul.mubr.msk.f32.gmra.mxu0 %vm590_vm0, %v4424_v26  ;;  %3780 = vmatmul.mubr.msk.f32.gmra.mxu1 %vm590_vm0, %v1667_v27 }
 0x141   : > { %3762 = vmatprep.mubr.msk.f32.mxu0 %vm590_vm0, %v4428_v28  ;;  %3782 = vmatprep.mubr.msk.f32.mxu1 %vm590_vm0, %v1668_v29 }
 0x144   : > { %3763 = vmatmul.mubr.msk.f32.gmra.mxu0 %vm590_vm0, %v4435_v30  ;;  %3783 = vmatmul.mubr.msk.f32.gmra.mxu1 %vm590_vm0, %v1669_v31 }
 0x145   : > { %3787 = vmatprep.mubr.msk.f32.mxu0 %vm590_vm0, %v4314_v58  ;;  %3807 = vmatprep.mubr.msk.f32.mxu1 %vm590_vm0, %v1474_v20 }
 0x148   : > { %3788 = vmatmul.mubr.msk.f32.vlgmr.msra.gmra.mxu0 %vm590_vm0, %v4317_v60  ;;  %3808 = vmatmul.mubr.msk.f32.vlgmr.msra.gmra.mxu1 %vm590_vm0, %v1475_v21 }
 0x149   : > { %3826 = vmatpush3.msra.mxu0 %v3424_v18  ;;  %3790 = vmatprep.mubr.msk.f32.mxu0 %vm590_vm0, %v4325_v62 }
 0x14a   : > { %3810 = vmatprep.mubr.msk.f32.mxu1 %vm590_vm0, %v1476_v22  ;;  %3846 = vmatpush3.msra.mxu1 %v3437_v19 }
 0x14b   : > { %3865 = vmatprep.subr.mxu0 %v3450_v32  ;;  %3885 = vmatprep.subr.mxu1 %v2799_v37 }
 0x14c   : > { %3791 = vmatmul.mubr.msk.f32.gmra.mxu0 %vm590_vm0, %v4330_v1  ;;  %3811 = vmatmul.mubr.msk.f32.gmra.mxu1 %vm590_vm0, %v4405_v23 }
 0x14d   : > { %3793 = vmatprep.mubr.msk.f32.mxu0 %vm590_vm0, %v4344_v4  ;;  %3813 = vmatprep.mubr.msk.f32.mxu1 %vm590_vm0, %v4412_v24 }
 0x150   : > { %3794 = vmatmul.mubr.msk.f32.gmra.mxu0 %vm590_vm0, %v4348_v6  ;;  %3814 = vmatmul.mubr.msk.f32.gmra.mxu1 %vm590_vm0, %v4416_v25 }
 0x151   : > { %3796 = vmatprep.mubr.msk.f32.mxu0 %vm590_vm0, %v4363_v9  ;;  %3816 = vmatprep.mubr.msk.f32.mxu1 %vm590_vm0, %v4424_v26 }
 0x154   : > { %3797 = vmatmul.mubr.msk.f32.gmra.mxu0 %vm590_vm0, %v4367_v11  ;;  %3817 = vmatmul.mubr.msk.f32.gmra.mxu1 %vm590_vm0, %v4428_v28 }
 0x155   : > { %3799 = vmatprep.mubr.msk.f32.mxu0 %vm590_vm0, %v4379_v13  ;;  %3819 = vmatprep.mubr.msk.f32.mxu1 %vm590_vm0, %v4435_v30 }
 0x158   : > { %3800 = vmatmul.mubr.msk.f32.gmra.mxu0 %vm590_vm0, %v1854_v33  ;;  %3820 = vmatmul.mubr.msk.f32.gmra.mxu1 %vm590_vm0, %v2041_v34 }
 0x159   : > { %3802 = vmatprep.mubr.msk.f32.mxu0 %vm590_vm0, %v1855_v35  ;;  %3822 = vmatprep.mubr.msk.f32.mxu1 %vm590_vm0, %v2042_v36 }
 0x15c   : > { %3803 = vmatmul.mubr.msk.f32.gmra.mxu0 %vm590_vm0, %v1856_v38  ;;  %3823 = vmatmul.mubr.msk.f32.gmra.mxu1 %vm590_vm0, %v2043_v39 }
 0x15d   : > { %3827 = vmatprep.mubr.msk.f32.mxu0 %vm590_vm0, %v4332_v2  ;;  %3847 = vmatprep.mubr.msk.f32.mxu1 %vm590_vm0, %v4330_v1 }
 0x160   : > { %3828 = vmatmul.mubr.msk.f32.vlgmr.msra.gmra.mxu0 %vm590_vm0, %v4346_v5  ;;  %3848 = vmatmul.mubr.msk.f32.vlgmr.msra.gmra.mxu1 %vm590_vm0, %v4344_v4 }
 0x161   : > { %3866 = vmatpush3.msra.mxu0 %v3450_v32  ;;  %3830 = vmatprep.mubr.msk.f32.mxu0 %vm590_vm0, %v4350_v7 }
 0x162   : > { %3850 = vmatprep.mubr.msk.f32.mxu1 %vm590_vm0, %v4348_v6  ;;  %3886 = vmatpush3.msra.mxu1 %v2799_v37 }
 0x163   : > { %3905 = vmatprep.subr.msk.mxu0 %vm614_vm1, %v2992_v49 }
 0x164   : > { %3831 = vmatmul.mubr.msk.f32.gmra.mxu0 %vm590_vm0, %v4365_v10  ;;  %3851 = vmatmul.mubr.msk.f32.gmra.mxu1 %vm590_vm0, %v4363_v9 }
 0x165   : > { %3833 = vmatprep.mubr.msk.f32.mxu0 %vm590_vm0, %v4369_v12  ;;  %3853 = vmatprep.mubr.msk.f32.mxu1 %vm590_vm0, %v4367_v11 }
 0x168   : > { %3834 = vmatmul.mubr.msk.f32.gmra.mxu0 %vm590_vm0, %v4381_v14  ;;  %3854 = vmatmul.mubr.msk.f32.gmra.mxu1 %vm590_vm0, %v4379_v13 }
 0x169   : > { %3836 = vmatprep.mubr.msk.f32.mxu0 %vm590_vm0, %v1667_v27  ;;  %3856 = vmatprep.mubr.msk.f32.mxu1 %vm590_vm0, %v1854_v33 }
 0x16c   : > { %3837 = vmatmul.mubr.msk.f32.gmra.mxu0 %vm590_vm0, %v1668_v29  ;;  %3857 = vmatmul.mubr.msk.f32.gmra.mxu1 %vm590_vm0, %v1855_v35 }
 0x16d   : > { %3839 = vmatprep.mubr.msk.f32.mxu0 %vm590_vm0, %v1669_v31  ;;  %3859 = vmatprep.mubr.msk.f32.mxu1 %vm590_vm0, %v1856_v38 }
 0x170   : > { %3840 = vmatmul.mubr.msk.f32.gmra.mxu0 %vm590_vm0, %v2228_v40  ;;  %3860 = vmatmul.mubr.msk.f32.gmra.mxu1 %vm590_vm0, %v2415_v41 }
 0x171   : > { %3842 = vmatprep.mubr.msk.f32.mxu0 %vm590_vm0, %v2229_v42  ;;  %3862 = vmatprep.mubr.msk.f32.mxu1 %vm590_vm0, %v2416_v43 }
 0x174   : > { %3843 = vmatmul.mubr.msk.f32.gmra.mxu0 %vm590_vm0, %v2230_v44  ;;  %3863 = vmatmul.mubr.msk.f32.gmra.mxu1 %vm590_vm0, %v2417_v45 }
 0x175   : > { %3867 = vmatprep.mubr.msk.f32.mxu0 %vm590_vm0, %v4405_v23 }
 0x178   : > { %3868 = vmatmul.mubr.msk.f32.vlgmr.msra.gmra.mxu0 %vm590_vm0, %v4412_v24 }
 0x179   : > { %3870 = vmatprep.mubr.msk.f32.mxu0 %vm590_vm0, %v4416_v25  ;;  %3906 = vmatpush3.msk.msra.mxu0 %vm614_vm1, %v2992_v49 }
 0x17c   : > { %3871 = vmatmul.mubr.msk.f32.gmra.mxu0 %vm590_vm0, %v4424_v26 }
 0x17d   : > { %3873 = vmatprep.mubr.msk.f32.mxu0 %vm590_vm0, %v4428_v28 }
 0x180   : > { %3874 = vmatmul.mubr.msk.f32.gmra.mxu0 %vm590_vm0, %v4435_v30 }
 0x181   : > { %3876 = vmatprep.mubr.msk.f32.mxu0 %vm590_vm0, %v2041_v34 }
 0x184   : > { %3877 = vmatmul.mubr.msk.f32.gmra.mxu0 %vm590_vm0, %v2042_v36 }
 0x185   : > { %3879 = vmatprep.mubr.msk.f32.mxu0 %vm590_vm0, %v2043_v39 }
 0x188   : > { %3880 = vmatmul.mubr.msk.f32.gmra.mxu0 %vm590_vm0, %v2602_v46 }
 0x189   : > { %3882 = vmatprep.mubr.msk.f32.mxu0 %vm590_vm0, %v2603_v47 }
 0x18c   : > { %3883 = vmatmul.mubr.msk.f32.gmra.mxu0 %vm590_vm0, %v2604_v48 }
 0x1d8   : > { %v4545_v50 = vpop.f32.mrf.mxu0  ;;  %v4547_v51 = vpop.f32.mrf.mxu1 }
 0x1da   : > { %v4549_v52 = vpop.f32.mrf.mxu0  ;;  %v4551_v53 = vpop.f32.mrf.mxu1 }
 0x1dc   : > { %v4553_v54 = vpop.f32.mrf.mxu0  ;;  %v4555_v55 = vpop.f32.mrf.mxu1 }
 0x1de   : > { %v4557_v56 = vpop.f32.mrf.mxu0  ;;  %v4559_v57 = vpop.f32.mrf.mxu1 }
 0x1e0   : > { %v4561_v58 = vpop.f32.mrf.mxu0  ;;  %v4563_v59 = vpop.f32.mrf.mxu1 }
 0x1e2   : > { %v4565_v60 = vpop.f32.mrf.mxu0  ;;  %v4567_v61 = vpop.f32.mrf.mxu1 }
 0x1e4   : > { %v4569_v62 = vpop.f32.mrf.mxu0  ;;  %v4571_v63 = vpop.f32.mrf.mxu1 }
 0x1e6   : > { %v4573_v0 = vpop.f32.mrf.mxu0  ;;  %v4575_v1 = vpop.f32.mrf.mxu1 }
 0x1e8   : > { %v4577_v2 = vpop.f32.mrf.mxu0  ;;  %v4579_v3 = vpop.f32.mrf.mxu1 }
 0x1ea   : > { %v4581_v4 = vpop.f32.mrf.mxu0  ;;  %v4583_v5 = vpop.f32.mrf.mxu1 }
 0x1ec   : > { %v4585_v6 = vpop.f32.mrf.mxu0  ;;  %v4587_v7 = vpop.f32.mrf.mxu1 }
 0x1ed   : > { %4891 = vst [vmem:[#allocation6_spill] sm:$0xff] %v4587_v7 }
 0x1ee   : > { %v4589_v8 = vpop.f32.mrf.mxu0  ;;  %v4591_v9 = vpop.f32.mrf.mxu1 }
 0x1ef   : > { %4892 = vst [vmem:[#allocation7_spill] sm:$0xff] %v4589_v8  ;;  %4893 = vst [vmem:[#allocation8_spill] sm:$0xff] %v4591_v9 }
 0x1f0   : > { %v3749_v10 = vpop.f32.mrf.mxu0  ;;  %v4593_v11 = vpop.f32.mrf.mxu1 }
 0x1f2   : > { %v1587_v12 = vpop.f32.mrf.mxu0  ;;  %v4595_v13 = vpop.f32.mrf.mxu1 }
 0x1f4   : > { %v3752_v14 = vpop.f32.mrf.mxu0  ;;  %v4597_v15 = vpop.f32.mrf.mxu1 }
 0x1f6   : > { %v1597_v16 = vpop.f32.mrf.mxu0  ;;  %v4599_v17 = vpop.f32.mrf.mxu1 }
 0x1f8   : > { %v4601_v18 = vpop.f32.mrf.mxu0  ;;  %v4603_v19 = vpop.f32.mrf.mxu1 }
 0x1fa   : > { %v4605_v20 = vpop.f32.mrf.mxu0  ;;  %v4607_v21 = vpop.f32.mrf.mxu1 }
 0x1fc   : > { %v4609_v22 = vpop.f32.mrf.mxu0  ;;  %v4611_v23 = vpop.f32.mrf.mxu1 }
 0x1fe   : > { %v4613_v24 = vpop.f32.mrf.mxu0  ;;  %v4615_v25 = vpop.f32.mrf.mxu1 }
 0x1ff   : > { %4894 = vst [vmem:[#allocation9_spill] sm:$0xff] %v4615_v25 }
 0x200   : > { %v4617_v26 = vpop.f32.mrf.mxu0  ;;  %v4619_v27 = vpop.f32.mrf.mxu1 }
 0x201   : > { %4895 = vst [vmem:[#allocation10_spill] sm:$0xff] %v4619_v27 }
 0x202   : > { %v4621_v28 = vpop.f32.mrf.mxu0  ;;  %v4623_v29 = vpop.f32.mrf.mxu1 }
 0x203   : > { %4896 = vst [vmem:[#allocation11_spill] sm:$0xff] %v4623_v29 }
 0x204   : > { %v4625_v30 = vpop.f32.mrf.mxu0  ;;  %v4627_v31 = vpop.f32.mrf.mxu1 }
 0x205   : > { %4897 = vst [vmem:[#allocation12_spill] sm:$0xff] %v4625_v30  ;;  %4898 = vst [vmem:[#allocation13_spill] sm:$0xff] %v4627_v31 }
 0x206   : > { %v4629_v32 = vpop.f32.mrf.mxu0  ;;  %v4631_v33 = vpop.f32.mrf.mxu1 }
 0x207   : > { %4899 = vst [vmem:[#allocation14_spill] sm:$0xff] %v4629_v32  ;;  %4900 = vst [vmem:[#allocation15_spill] sm:$0xff] %v4631_v33 }
 0x208   : > { %v3789_v34 = vpop.f32.mrf.mxu0  ;;  %v3809_v35 = vpop.f32.mrf.mxu1 }
 0x20a   : > { %v1961_v36 = vpop.f32.mrf.mxu0  ;;  %v2148_v38 = vpop.f32.mrf.mxu1 }
 0x20c   : > { %v3792_v39 = vpop.f32.mrf.mxu0  ;;  %v4633_v40 = vpop.f32.mrf.mxu1 }
 0x20e   : > { %v1971_v41 = vpop.f32.mrf.mxu0  ;;  %v4635_v42 = vpop.f32.mrf.mxu1 }
 0x210   : > { %v4637_v43 = vpop.f32.mrf.mxu0  ;;  %v4639_v44 = vpop.f32.mrf.mxu1 }
 0x211   : > { %4901 = vst [vmem:[#allocation16_spill] sm:$0xff] %v4639_v44 }
 0x212   : > { %v4641_v45 = vpop.f32.mrf.mxu0  ;;  %v4643_v46 = vpop.f32.mrf.mxu1 }
 0x213   : > { %4902 = vst [vmem:[#allocation17_spill] sm:$0xff] %v4643_v46 }
 0x214   : > { %v4645_v47 = vpop.f32.mrf.mxu0  ;;  %v4647_v48 = vpop.f32.mrf.mxu1 }
 0x215   : > { %4903 = vst [vmem:[#allocation18_spill] sm:$0xff] %v4645_v47  ;;  %4904 = vst [vmem:[#allocation19_spill] sm:$0xff] %v4647_v48 }
 0x216   : > { %v4649_v37 = vpop.f32.mrf.mxu0  ;;  %v4651_v49 = vpop.f32.mrf.mxu1 }
 0x217   : > { %4905 = vst [vmem:[#allocation20_spill] sm:$0xff] %v4649_v37  ;;  %4906 = vst [vmem:[#allocation21_spill] sm:$0xff] %v4651_v49 }
 0x218   : > { %v4653_v33 = vpop.f32.mrf.mxu0  ;;  %v4655_v31 = vpop.f32.mrf.mxu1 }
 0x219   : > { %4907 = vst [vmem:[#allocation22_spill] sm:$0xff] %v4653_v33  ;;  %4908 = vst [vmem:[#allocation23_spill] sm:$0xff] %v4655_v31  ;;  %v1418_v31 = vadd.f32 %v4547_v51, %v4545_v50  ;;  %v1423_v50 = vadd.f32 %v4559_v57, %v4557_v56 }
 0x21a   : > { %v4657_v32 = vpop.f32.mrf.mxu0  ;;  %v4659_v29 = vpop.f32.mrf.mxu1 }
 0x21b   : > { %4909 = vst [vmem:[#allocation24_spill] sm:$0xff] %v4657_v32  ;;  %4910 = vst [vmem:[#allocation25_spill] sm:$0xff] %v4659_v29  ;;  %v1413_v29 = vadd.f32 %v4551_v53, %v4549_v52  ;;  %v1648_v53 = vadd.f32 %v1597_v16, %v1423_v50  ;;  %v4918_v50 = vld [vmem:[#allocation7_spill] sm:$0xff] }
 0x21c   : > { %v4661_v30 = vpop.f32.mrf.mxu0  ;;  %v4663_v27 = vpop.f32.mrf.mxu1 }
 0x21d   : > { %4911 = vst [vmem:[#allocation26_spill] sm:$0xff] %v4661_v30  ;;  %4912 = vst [vmem:[#allocation27_spill] sm:$0xff] %v4663_v27  ;;  %v1647_v30 = vadd.f32 %v3749_v10, %v1418_v31  ;;  %v1438_v10 = vadd.f32 %v4563_v59, %v4561_v58  ;;  %v1448_v58 = vadd.f32 %v4571_v63, %v4569_v62 }
 0x21e   : > { %v4665_v46 = vpop.f32.mrf.mxu0  ;;  %v4667_v47 = vpop.f32.mrf.mxu1  ;;  %v1458_v62 = vadd.f32 %v4579_v3, %v4577_v2 }
 0x21f   : > { %4913 = vst [vmem:[#allocation28_spill] sm:$0xff] %v4665_v46  ;;  %4914 = vst [vmem:[#allocation29_spill] sm:$0xff] %v4667_v47  ;;  %v1646_v46 = vadd.f32 %v1587_v12, %v1413_v29  ;;  %v1428_v47 = vadd.f32 %v4555_v55, %v4553_v54  ;;  %v1834_v51 = vadd.f32 %v4593_v11, %v1647_v30 }
 0x220   : > { %v3829_v48 = vpop.f32.mrf.mxu0  ;;  %v3849_v37 = vpop.f32.mrf.mxu1  ;;  %v1433_v29 = vadd.f32 %v4567_v61, %v4565_v60  ;;  %v1651_v11 = vadd.f32 %v4601_v18, %v1438_v10  ;;  %v1443_v60 = vadd.f32 %v4575_v1, %v4573_v0  ;;  %v1453_v0 = vadd.f32 %v4583_v5, %v4581_v4 }
 0x221   : > { %v1833_v52 = vadd.f32 %v4595_v13, %v1646_v46  ;;  %v2021_v12 = vadd.f32 %v3789_v34, %v1834_v51  ;;  %v1835_v13 = vadd.f32 %v4599_v17, %v1648_v53  ;;  %v1653_v17 = vadd.f32 %v4609_v22, %v1448_v58 }
 0x222   : > { %v2335_v44 = vpop.f32.mrf.mxu0  ;;  %v2522_v49 = vpop.f32.mrf.mxu1  ;;  %v1650_v16 = vadd.f32 %v4605_v20, %v1433_v29  ;;  %v1838_v18 = vadd.f32 %v4603_v19, %v1651_v11 }
 0x223   : > { %v2020_v56 = vadd.f32 %v1961_v36, %v1833_v52  ;;  %v2208_v59 = vadd.f32 %v3809_v35, %v2021_v12  ;;  %v1652_v35 = vadd.f32 %v4613_v24, %v1443_v60  ;;  %v1654_v24 = vadd.f32 %v4621_v28, %v1453_v0  ;;  %v4923_v12 = vld [vmem:[#allocation17_spill] sm:$0xff] }
 0x224   : > { %v3832_v9 = vpop.f32.mrf.mxu0  ;;  %v4671_v32 = vpop.f32.mrf.mxu1  ;;  %v1837_v63 = vadd.f32 %v4607_v21, %v1650_v16  ;;  %v2025_v19 = vadd.f32 %v4637_v43, %v1838_v18  ;;  %v1840_v21 = vadd.f32 %v4611_v23, %v1653_v17 }
 0x225   : > { %4915 = vst [vmem:[#allocation30_spill] sm:$0xff] %v4671_v32  ;;  %v1649_v32 = vadd.f32 %v3752_v14, %v1428_v47  ;;  %v2207_v61 = vadd.f32 %v2148_v38, %v2020_v56  ;;  %v4924_v56 = vld [vmem:[#allocation20_spill] sm:$0xff] }
 0x226   : > { %v2345_v33 = vpop.f32.mrf.mxu0  ;;  %v4679_v8 = vpop.f32.mrf.mxu1  ;;  %v2024_v3 = vadd.f32 %v4641_v45, %v1837_v63  ;;  %v4921_v45 = vld [vmem:[#allocation18_spill] sm:$0xff] }
 0x227   : > { %v1836_v57 = vadd.f32 %v4597_v15, %v1649_v32  ;;  %v2022_v15 = vadd.f32 %v1971_v41, %v1835_v13  ;;  %v2395_v32 = vadd.f32 %v3829_v48, %v2208_v59  ;;  %v2394_v36 = vadd.f32 %v2335_v44, %v2207_v61  ;;  %v4917_v44 = vld [vmem:[#allocation9_spill] sm:$0xff]  ;;  %v4926_v13 = vld [vmem:[#allocation11_spill] sm:$0xff]  ;;  %v4928_v61 = vld [vmem:[#allocation14_spill] sm:$0xff] }
 0x228   : > { %v4675_v27 = vpop.f32.mrf.mxu0  ;;  %v4691_v54 = vpop.f32.mrf.mxu1  ;;  %v1839_v46 = vadd.f32 %v4917_v44, %v1652_v35  ;;  %v2027_v53 = vadd.f32 %v4921_v45, %v1840_v21  ;;  %v2211_v29 = vadd.f32 %v4923_v12, %v2024_v3  ;;  %v1841_v16 = vadd.f32 %v4926_v13, %v1654_v24  ;;  %v4930_v35 = vld [vmem:[#allocation22_spill] sm:$0xff]  ;;  %v4932_v3 = vld [vmem:[#allocation24_spill] sm:$0xff]  ;;  %v4937_v45 = vld [vmem:[#allocation25_spill] sm:$0xff] }
 0x229   : > { %v2023_v30 = vadd.f32 %v3792_v39, %v1836_v57  ;;  %v1655_v39 = vadd.f32 %v4617_v26, %v1458_v62  ;;  %v2209_v2 = vadd.f32 %v4635_v42, %v2022_v15  ;;  %v2582_v41 = vadd.f32 %v3849_v37, %v2395_v32  ;;  %v4919_v26 = vld [vmem:[#allocation8_spill] sm:$0xff]  ;;  %v4922_v37 = vld [vmem:[#allocation10_spill] sm:$0xff]  ;;  %v4929_v62 = vld [vmem:[#allocation19_spill] sm:$0xff] }
 0x22a   : > { %v4681_v25 = vpop.f32.mrf.mxu0  ;;  %v4705_v31 = vpop.f32.mrf.mxu1  ;;  %v2581_v47 = vadd.f32 %v2522_v49, %v2394_v36  ;;  %v1463_v51 = vadd.f32 %v4919_v26, %v4918_v50  ;;  %v4920_v42 = vld [vmem:[#allocation16_spill] sm:$0xff]  ;;  %v2214_v63 = vadd.f32 %v4929_v62, %v2027_v53  ;;  %v2028_v21 = vadd.f32 %v4932_v3, %v1841_v16  ;;  %v4936_v26 = vld [vmem:[#allocation26_spill] sm:$0xff] }
 0x22b   : > { %v2210_v1 = vadd.f32 %v4633_v40, %v2023_v30  ;;  %v4916_v40 = vld [vmem:[#allocation6_spill] sm:$0xff]  ;;  %v2396_v48 = vadd.f32 %v2345_v33, %v2209_v2  ;;  %v2212_v52 = vadd.f32 %v4920_v42, %v2025_v19  ;;  %v4925_v57 = vld [vmem:[#allocation12_spill] sm:$0xff]  ;;  %v2398_v17 = vadd.f32 %v4681_v25, %v2211_v29  ;;  %v4931_v2 = vld [vmem:[#allocation21_spill] sm:$0xff] }
 0x22c   : > { %v4686_v7 = vpop.f32.mrf.mxu0  ;;  %v4723_v38 = vpop.f32.mrf.mxu1  ;;  %v1468_v43 = vadd.f32 %v4916_v40, %v4585_v6  ;;  %v2026_v6 = vadd.f32 %v4924_v56, %v1839_v46  ;;  %v4745_v33 = vld [vmem:[%s4875_s7] ss:$0 sm:$0xff]  ;;  %v1656_v15 = vadd.f32 %v4928_v61, %v1463_v51  ;;  %v4934_v40 = vld [vmem:[#allocation15_spill] sm:$0xff]  ;;  %v2215_v53 = vadd.f32 %v4937_v45, %v2028_v21 }
 0x22d   : > { %v2397_v4 = vadd.f32 %v3832_v9, %v2210_v1  ;;  %v1842_v9 = vadd.f32 %v4922_v37, %v1655_v39  ;;  %v4927_v58 = vld [vmem:[#allocation30_spill] sm:$0xff]  ;;  %v2399_v30 = vadd.f32 %v4675_v27, %v2212_v52  ;;  %v2583_v18 = vadd.f32 %v4679_v8, %v2396_v48  ;;  %v4933_v8 = vld [vmem:[#allocation13_spill] sm:$0xff]  ;;  %v4935_v48 = vld [vmem:[#allocation23_spill] sm:$0xff] }
 0x22e   : > { %v4693_v55 = vpop.f32.mrf.mxu0  ;;  %v2552_v23 = vpop.f32.mrf.mxu1  ;;  %v1657_v11 = vadd.f32 %v4925_v57, %v1468_v43  ;;  %v2213_v27 = vadd.f32 %v4931_v2, %v2026_v6  ;;  %v1843_v43 = vadd.f32 %v4934_v40, %v1656_v15  ;;  %v2585_v44 = vadd.f32 %v4705_v31, %v2398_v17  ;;  %v4939_v6 = vld [vmem:[#allocation27_spill] sm:$0xff] }
 0x22f   : > { %v2584_v59 = vadd.f32 %v4927_v58, %v2397_v4  ;;  %v2029_v36 = vadd.f32 %v4930_v35, %v1842_v9  ;;  %v2401_v4 = vadd.f32 %v4686_v7, %v2214_v63  ;;  %v4940_v58 = vld [vmem:[#allocation29_spill] sm:$0xff] }
 0x230   : > { %v4699_v14 = vpop.f32.mrf.mxu0  ;;  %v3861_v0 = vpop.f32.mrf.mxu1  ;;  %v1844_v25 = vadd.f32 %v4933_v8, %v1657_v11  ;;  %v2400_v46 = vadd.f32 %v4693_v55, %v2213_v27  ;;  %v3464_v27 = vld [vmem:[%s4877_s9] ss:$0 sm:$0xff] }
 0x231   : > { %v2216_v50 = vadd.f32 %v4935_v48, %v2029_v36  ;;  %v2588_v55 = vadd.f32 %v4723_v38, %v2401_v4  ;;  %v2968_v8 = vld [vmem:[%s4181_s29] sm:$0xff] }
 0x232   : > { %v4707_v34 = vpop.f32.mrf.mxu0  ;;  %v2031_v51 = vadd.f32 %v4936_v26, %v1844_v25  ;;  %v2562_v42 = vpop.f32.mrf.mxu1  ;;  %v2587_v12 = vadd.f32 %v2552_v23, %v2400_v46  ;;  %v2969_v25 = vld [vmem:[%s4181_s29 + $0x8] sm:$0xff]  ;;  %v2971_v46 = vld [vmem:[%s4181_s29 + $0x18] sm:$0xff] }
 0x233   : > { %v2403_v31 = vadd.f32 %v4699_v14, %v2216_v50  ;;  %v2402_v29 = vadd.f32 %v4707_v34, %v2215_v53 }
 0x234   : > { %v4713_v20 = vpop.f32.mrf.mxu0  ;;  %v3864_v57 = vpop.f32.mrf.mxu1 }
 0x235   : > { %v2590_v14 = vadd.f32 %v3861_v0, %v2403_v31  ;;  %v2589_v34 = vadd.f32 %v2562_v42, %v2402_v29  ;;  %v2975_v31 = vld [vmem:[%s4181_s29 + $0x38] sm:$0xff] }
 0x236   : > { %v4725_v22 = vpop.f32.mrf.mxu0  ;;  %v2572_v15 = vpop.f32.mrf.mxu1 }
 0x238   : > { %v3869_v5 = vpop.f32.mrf.mxu0 }
 0x239   : > { %v2769_v10 = vadd.f32 %v3869_v5, %v2582_v41  ;;  %v2586_v41 = vadd.f32 %v4691_v54, %v2399_v30 }
 0x23a   : > { %v2709_v28 = vpop.f32.mrf.mxu0 }
 0x23b   : > { %v2768_v49 = vadd.f32 %v2709_v28, %v2581_v47  ;;  %v2788_v1 = vadd.f32 %v4745_v33, %v2769_v10  ;;  %v4938_v10 = vld [vmem:[#allocation28_spill] sm:$0xff] }
 0x23c   : > { %v3872_v60 = vpop.f32.mrf.mxu0  ;;  %v2030_v28 = vadd.f32 %v4938_v10, %v1843_v43 }
 0x23d   : > { %v2787_v32 = vadd.f32 %v4745_v33, %v2768_v49  ;;  %v2771_v19 = vadd.f32 %v3872_v60, %v2584_v59  ;;  %v2218_v49 = vadd.f32 %v4939_v6, %v2031_v51 }
 0x23e   : > { %v2719_v39 = vpop.f32.mrf.mxu0  ;;  %v2217_v59 = vadd.f32 %v4940_v58, %v2030_v28 }
 0x23f   : > { %v2770_v24 = vadd.f32 %v2719_v39, %v2583_v18  ;;  %3887 = vmatprep.mubr.msk.f32.mxu1 %vm590_vm0, %v2787_v32  ;;  %v2790_v54 = vadd.f32 %v4745_v33, %v2771_v19  ;;  %v2405_v30 = vadd.f32 %v4713_v20, %v2218_v49 }
 0x240   : > { %v3875_v5 = vpop.f32.mrf.mxu0  ;;  %3888 = vmatmul.mubr.msk.f32.vlgmr.msra.gmra.mxu1 %vm590_vm0, %v2788_v1  ;;  %v2404_v60 = vadd.f32 %v4725_v22, %v2217_v59 }
 0x241   : > { %v2789_v47 = vadd.f32 %v4745_v33, %v2770_v24  ;;  %v2773_v52 = vadd.f32 %v3875_v5, %v2586_v41  ;;  %v2592_v63 = vadd.f32 %v3864_v57, %v2405_v30  ;;  %v2976_v57 = vld [vmem:[%s4181_s29 + $0x40] sm:$0xff]  ;;  %v2978_v30 = vld [vmem:[%s4181_s29 + $0x50] sm:$0xff] }
 0x242   : > { %v2729_v7 = vpop.f32.mrf.mxu0  ;;  %v2591_v20 = vadd.f32 %v2572_v15, %v2404_v60  ;;  %v3477_v15 = vld [vmem:[%s4879_s11] ss:$0 sm:$0xff] }
 0x243   : > { %v2772_v37 = vadd.f32 %v2729_v7, %v2585_v44  ;;  %3890 = vmatprep.mubr.msk.f32.mxu1 %vm590_vm0, %v2789_v47  ;;  %v2792_v11 = vadd.f32 %v4745_v33, %v2773_v52  ;;  %v2970_v44 = vld [vmem:[%s4181_s29 + $0x10] sm:$0xff]  ;;  %v2973_v52 = vld [vmem:[%s4181_s29 + $0x28] sm:$0xff] }
 0x244   : > { %v3878_v9 = vpop.f32.mrf.mxu0  ;;  %3891 = vmatmul.mubr.msk.f32.gmra.mxu1 %vm590_vm0, %v2790_v54  ;;  %v2972_v54 = vld [vmem:[%s4181_s29 + $0x20] sm:$0xff] }
 0x245   : > { %v2791_v56 = vadd.f32 %v4745_v33, %v2772_v37  ;;  %v2775_v13 = vadd.f32 %v3878_v9, %v2588_v55  ;;  %v2974_v55 = vld [vmem:[%s4181_s29 + $0x30] sm:$0xff] }
 0x246   : > { %v2739_v16 = vpop.f32.mrf.mxu0 }
 0x247   : > { %v2774_v38 = vadd.f32 %v2739_v16, %v2587_v12  ;;  %3893 = vmatprep.mubr.msk.f32.mxu1 %vm590_vm0, %v2791_v56  ;;  %v2794_v18 = vadd.f32 %v4745_v33, %v2775_v13 }
 0x248   : > { %v3881_v23 = vpop.f32.mrf.mxu0  ;;  %3894 = vmatmul.mubr.msk.f32.gmra.mxu1 %vm590_vm0, %v2792_v11  ;;  %v2977_v11 = vld [vmem:[%s4181_s29 + $0x48] sm:$0xff] }
 0x249   : > { %v2793_v61 = vadd.f32 %v4745_v33, %v2774_v38  ;;  %v2777_v17 = vadd.f32 %v3881_v23, %v2590_v14  ;;  %v2979_v23 = vld [vmem:[%s4181_s29 + $0x58] sm:$0xff] }
 0x24a   : > { %v2749_v32 = vpop.f32.mrf.mxu0 }
 0x24b   : > { %v2776_v62 = vadd.f32 %v2749_v32, %v2589_v34  ;;  %3896 = vmatprep.mubr.msk.f32.mxu1 %vm590_vm0, %v2793_v61  ;;  %v2796_v22 = vadd.f32 %v4745_v33, %v2777_v17 }
 0x24c   : > { %v3884_v35 = vpop.f32.mrf.mxu0  ;;  %3897 = vmatmul.mubr.msk.f32.gmra.mxu1 %vm590_vm0, %v2794_v18 }
 0x24d   : > { %v2795_v36 = vadd.f32 %v4745_v33, %v2776_v62  ;;  %v2779_v0 = vadd.f32 %v3884_v35, %v2592_v63 }
 0x24e   : > { %v2759_v1 = vpop.f32.mrf.mxu0 }
 0x24f   : > { %v2778_v19 = vadd.f32 %v2759_v1, %v2591_v20  ;;  %3899 = vmatprep.mubr.msk.f32.mxu1 %vm590_vm0, %v2795_v36  ;;  %v2798_v2 = vadd.f32 %v4745_v33, %v2779_v0 }
 0x250   : > { %3900 = vmatmul.mubr.msk.f32.gmra.mxu1 %vm590_vm0, %v2796_v22 }
 0x251   : > { %v2797_v39 = vadd.f32 %v4745_v33, %v2778_v19 }
 0x253   : > { %3902 = vmatprep.mubr.msk.f32.mxu1 %vm590_vm0, %v2797_v39 }
 0x254   : > { %3903 = vmatmul.mubr.msk.f32.gmra.mxu1 %vm590_vm0, %v2798_v2 }
 0x300   : > { %v3889_v3 = vpop.f32.mrf.mxu1 }
 0x301   : > { %v2915_v21 = vadd.f32 %v3889_v3, %v3464_v27 }
 0x302   : > { %v2909_v24 = vpop.f32.mrf.mxu1 }
 0x303   : > { %v2910_v41 = vadd.f32 %v3464_v27, %v2909_v24  ;;  %v2981_v33 = vadd.f32 %v2969_v25, %v2915_v21 }
 0x304   : > { %v3892_v4 = vpop.f32.mrf.mxu1 }
 0x305   : > { %v2980_v5 = vadd.f32 %v2968_v8, %v2910_v41  ;;  %v2925_v40 = vadd.f32 %v3892_v4, %v3464_v27 }
 0x306   : > { %v2919_v43 = vpop.f32.mrf.mxu1 }
 0x307   : > { %v2920_v47 = vadd.f32 %v3464_v27, %v2919_v43  ;;  %3907 = vmatprep.mubr.msk.f32.mxu0 %vm604_vm3, %v2980_v5  ;;  %v2983_v26 = vadd.f32 %v2971_v46, %v2925_v40 }
 0x308   : > { %v3895_v48 = vpop.f32.mrf.mxu1  ;;  %3908 = vmatmul.mubr.msk.f32.vlgmr.msra.gmra.mxu0 %vm604_vm3, %v2981_v33 }
 0x309   : > { %v2982_v50 = vadd.f32 %v2970_v44, %v2920_v47  ;;  %v2935_v51 = vadd.f32 %v3895_v48, %v3464_v27 }
 0x30a   : > { %v2929_v42 = vpop.f32.mrf.mxu1 }
 0x30b   : > { %v2930_v7 = vadd.f32 %v3464_v27, %v2929_v42  ;;  %3910 = vmatprep.mubr.msk.f32.mxu0 %vm604_vm3, %v2982_v50  ;;  %v2985_v10 = vadd.f32 %v2973_v52, %v2935_v51 }
 0x30c   : > { %v3898_v45 = vpop.f32.mrf.mxu1  ;;  %3911 = vmatmul.mubr.msk.f32.gmra.mxu0 %vm604_vm3, %v2983_v26 }
 0x30d   : > { %v2984_v53 = vadd.f32 %v2972_v54, %v2930_v7  ;;  %v2945_v28 = vadd.f32 %v3898_v45, %v3464_v27 }
 0x30e   : > { %v2939_v37 = vpop.f32.mrf.mxu1 }
 0x30f   : > { %v2940_v9 = vadd.f32 %v3464_v27, %v2939_v37  ;;  %3913 = vmatprep.mubr.msk.f32.mxu0 %vm604_vm3, %v2984_v53  ;;  %v2987_v56 = vadd.f32 %v2975_v31, %v2945_v28 }
 0x310   : > { %v3901_v12 = vpop.f32.mrf.mxu1  ;;  %3914 = vmatmul.mubr.msk.f32.gmra.mxu0 %vm604_vm3, %v2985_v10 }
 0x311   : > { %v2986_v29 = vadd.f32 %v2974_v55, %v2940_v9  ;;  %v2955_v6 = vadd.f32 %v3901_v12, %v3464_v27 }
 0x312   : > { %v2949_v49 = vpop.f32.mrf.mxu1 }
 0x313   : > { %v2950_v13 = vadd.f32 %v3464_v27, %v2949_v49  ;;  %3916 = vmatprep.mubr.msk.f32.mxu0 %vm604_vm3, %v2986_v29  ;;  %v2989_v59 = vadd.f32 %v2977_v11, %v2955_v6 }
 0x314   : > { %v3904_v16 = vpop.f32.mrf.mxu1  ;;  %3917 = vmatmul.mubr.msk.f32.gmra.mxu0 %vm604_vm3, %v2987_v56 }
 0x315   : > { %v2988_v58 = vadd.f32 %v2976_v57, %v2950_v13  ;;  %v2965_v38 = vadd.f32 %v3904_v16, %v3464_v27 }
 0x316   : > { %v2959_v14 = vpop.f32.mrf.mxu1 }
 0x317   : > { %v2960_v34 = vadd.f32 %v3464_v27, %v2959_v14  ;;  %3919 = vmatprep.mubr.msk.f32.mxu0 %vm604_vm3, %v2988_v58  ;;  %v2991_v61 = vadd.f32 %v2979_v23, %v2965_v38 }
 0x318   : > { %3920 = vmatmul.mubr.msk.f32.gmra.mxu0 %vm604_vm3, %v2989_v59 }
 0x319   : > { %v2990_v60 = vadd.f32 %v2978_v30, %v2960_v34 }
 0x31b   : > { %3922 = vmatprep.mubr.msk.f32.mxu0 %vm604_vm3, %v2990_v60 }
 0x31c   : > { %3923 = vmatmul.mubr.msk.f32.gmra.mxu0 %vm604_vm3, %v2991_v61 }
 0x3c8   : > { %v3909_v18 = vpop.f32.mrf.mxu0 }
 0x3c9   : > { %v3111_v17 = vadd.f32 %v3909_v18, %v3477_v15 }
 0x3ca   : > { %v3105_v32 = vpop.f32.mrf.mxu0 }
 0x3cb   : > { %3165 = vst.msk [vmem:[%s4193_s24 + $0x8] sm:$0xff] %vm590_vm0, %v3111_v17  ;;  %v3106_v62 = vadd.f32 %v3477_v15, %v3105_v32 }
 0x3cc   : > { %v3912_v63 = vpop.f32.mrf.mxu0 }
 0x3cd   : > { %3164 = vst.msk [vmem:[%s4193_s24] sm:$0xff] %vm590_vm0, %v3106_v62  ;;  %v3121_v35 = vadd.f32 %v3912_v63, %v3477_v15 }
 0x3ce   : > { %v3115_v20 = vpop.f32.mrf.mxu0 }
 0x3cf   : > { %3167 = vst.msk [vmem:[%s4193_s24 + $0x18] sm:$0xff] %vm590_vm0, %v3121_v35  ;;  %v3116_v36 = vadd.f32 %v3477_v15, %v3115_v20 }
 0x3d0   : > { %v3915_v22 = vpop.f32.mrf.mxu0 }
 0x3d1   : > { %3166 = vst.msk [vmem:[%s4193_s24 + $0x10] sm:$0xff] %vm590_vm0, %v3116_v36  ;;  %v3131_v0 = vadd.f32 %v3915_v22, %v3477_v15 }
 0x3d2   : > { %v3125_v1 = vpop.f32.mrf.mxu0 }
 0x3d3   : > { %3169 = vst.msk [vmem:[%s4193_s24 + $0x28] sm:$0xff] %vm590_vm0, %v3131_v0  ;;  %v3126_v19 = vadd.f32 %v3477_v15, %v3125_v1 }
 0x3d4   : > { %v3918_v39 = vpop.f32.mrf.mxu0 }
 0x3d5   : > { %3168 = vst.msk [vmem:[%s4193_s24 + $0x20] sm:$0xff] %vm590_vm0, %v3126_v19  ;;  %v3141_v2 = vadd.f32 %v3918_v39, %v3477_v15 }
 0x3d6   : > { %v3135_v27 = vpop.f32.mrf.mxu0 }
 0x3d7   : > { %3171 = vst.msk [vmem:[%s4193_s24 + $0x38] sm:$0xff] %vm590_vm0, %v3141_v2  ;;  %v3136_v3 = vadd.f32 %v3477_v15, %v3135_v27 }
 0x3d8   : > { %v3921_v21 = vpop.f32.mrf.mxu0 }
 0x3d9   : > { %3170 = vst.msk [vmem:[%s4193_s24 + $0x30] sm:$0xff] %vm590_vm0, %v3136_v3  ;;  %v3151_v24 = vadd.f32 %v3921_v21, %v3477_v15 }
 0x3da   : > { %v3145_v8 = vpop.f32.mrf.mxu0 }
 0x3db   : > { %3173 = vst.msk [vmem:[%s4193_s24 + $0x48] sm:$0xff] %vm590_vm0, %v3151_v24  ;;  %v3146_v25 = vadd.f32 %v3477_v15, %v3145_v8 }
 0x3dc   : > { %v3924_v41 = vpop.f32.mrf.mxu0 }
 0x3dd   : > { %3172 = vst.msk [vmem:[%s4193_s24 + $0x40] sm:$0xff] %vm590_vm0, %v3146_v25  ;;  %v3161_v4 = vadd.f32 %v3924_v41, %v3477_v15 }
 0x3de   : > { %v3155_v5 = vpop.f32.mrf.mxu0 }
 0x3df   : > { %3175 = vst.msk [vmem:[%s4193_s24 + $0x58] sm:$0xff] %vm590_vm0, %v3161_v4  ;;  %v3156_v33 = vadd.f32 %v3477_v15, %v3155_v5 }
 0x3e1   : > { %3174 = vst.msk [vmem:[%s4193_s24 + $0x50] sm:$0xff] %vm590_vm0, %v3156_v33 }
 0x3e2 PF: > { %s22_s25 = sadd.s32 1, %s4012_s25   ;;  %s4941_s22 = sld [smem:[#allocation3_spill]] }
 0x3e3   : > { %p19_p13 = scmp.ge.s32.totalorder %s22_s25, 10   ;;  %s4942_s29 = sld [smem:[#allocation4_spill]] }
 0x3e4   : > { %s4943_s24 = sld [smem:[#allocation5_spill]]  ;;  %s4944_s21 = smov %s4004_s23 }
 0x3e5   :  { %21 = sbr.rel (!%p19_p13) target bundleno = 4 (0x4), region = 120 }
 0x3e9   : > { %s4945_s23 = smov %s4942_s29 }

</bundles_post_ra>
